<compile_context>
chip_gen: v6e
topology: v6e:2x2x1
jax: 0.10.0
libtpu: 0.0.40
codegen_flags: <defaults>
</compile_context>

<pallas_src>
import jax
import jax.numpy as jnp
from jax.experimental import pallas as pl
from jax.experimental.pallas import tpu as pltpu


def _round_up(v, m):
    return (v + m - 1) // m * m


def conv_br(x, conv_weight, bn_gamma, bn_beta, bn_mean, bn_var, *,
            stride=1, padding=0, dilation=1, eps=1e-5,
            cout_tile=None, compute_dtype=jnp.bfloat16):
    """Fused ConvBR forward (eval-mode BN).

    x: (N, Cin, H, W) NCHW, conv_weight: (Cout, Cin, KH, KW).
    Returns (N, Cout, Hout, Wout) in x.dtype.
    """
    N, C_in, H, W = map(int, x.shape)
    C_out, C_in_w, KH, KW = map(int, conv_weight.shape)
    assert C_in_w == C_in, "weight Cin mismatch"
    s, p, d = int(stride), int(padding), int(dilation)

    H_out = (H + 2 * p - d * (KH - 1) - 1) // s + 1
    W_out = (W + 2 * p - d * (KW - 1) - 1) // s + 1
    assert H_out > 0 and W_out > 0, "empty conv output"
    M = H_out * W_out
    H_pad, W_pad = H + 2 * p, W + 2 * p
    cdt = compute_dtype

    # ---- host-side parameter prep (tiny tensors only; activations untouched) ----
    # im2col-ordered weights: rows = Cout, cols ordered (kh, kw, cin-padded-to-8).
    C_in_al = _round_up(C_in, 8)          # sublane-aligned per-tap slot in col buffer
    Kdim = KH * KW * C_in_al
    w_t = jnp.transpose(conv_weight, (0, 2, 3, 1))                 # (Cout, KH, KW, Cin)
    if C_in_al != C_in:
        w_t = jnp.pad(w_t, ((0, 0), (0, 0), (0, 0), (0, C_in_al - C_in)))
    w2 = w_t.reshape(C_out, Kdim).astype(cdt)                      # bf16 weights

    scale = (bn_gamma / jnp.sqrt(bn_var + eps)).astype(jnp.float32)  # (Cout,)
    bias = (bn_beta - bn_mean * scale).astype(jnp.float32)           # (Cout,)

    # Output-channel tiling. 256 fills the v6e/v7x MXU; pass cout_tile=128 on v5e.
    if cout_tile is None:
        if C_out % 256 == 0:
            cout_tile = 256
        elif C_out % 128 == 0:
            cout_tile = 128
        elif C_out <= 512:
            cout_tile = _round_up(C_out, 8)   # single tile, sublane-aligned
        else:
            cout_tile = 128
    assert cout_tile % 8 == 0
    C_out_pad = _round_up(C_out, cout_tile)
    if C_out_pad != C_out:
        w2 = jnp.pad(w2, ((0, C_out_pad - C_out), (0, 0)))
        scale = jnp.pad(scale, (0, C_out_pad - C_out))
        bias = jnp.pad(bias, (0, C_out_pad - C_out))
    scale2 = scale.reshape(C_out_pad, 1)
    bias2 = bias.reshape(C_out_pad, 1)

    n_cout = C_out_pad // cout_tile
    grid = (N, n_cout)        # image outer ("parallel"), cout tiles inner ("arbitrary")

    def kernel(x_ref, w_ref, sc_ref, b_ref, o_ref, col_ref, *maybe_xpad):
        xpad_ref = maybe_xpad[0] if p > 0 else None
        j = pl.program_id(1)

        # Build the padded image + im2col buffer once per image (only at j == 0).
        @pl.when(j == 0)
        def _build():
            if p > 0:
                # Zero only the halo, copy the interior, keep everything in bf16.
                zr = jnp.zeros((C_in, p, W_pad), cdt)
                zc = jnp.zeros((C_in, H_pad, p), cdt)
                xpad_ref[:, :p, :] = zr
                xpad_ref[:, H_pad - p:, :] = zr
                xpad_ref[:, :, :p] = zc
                xpad_ref[:, :, W_pad - p:] = zc
                xpad_ref[:, p:p + H, p:p + W] = x_ref[0].astype(cdt)
            if C_in_al != C_in:
                # Filler rows of the col buffer must be zero (their matching
                # weight columns are zero-padded on the host).
                col_ref[...] = jnp.zeros_like(col_ref)

            src = xpad_ref if p > 0 else x_ref.at[0]
            for kh in range(KH):
                for kw in range(KW):
                    r0, c0 = kh * d, kw * d
                    rs = slice(r0, r0 + H_out) if s == 1 else pl.ds(r0, H_out, s)
                    cs = slice(c0, c0 + W_out) if s == 1 else pl.ds(c0, W_out, s)
                    row0 = (kh * KW + kw) * C_in_al
                    col_ref[row0:row0 + C_in, :] = (
                        src[:, rs, cs].astype(cdt).reshape(C_in, M))

        # One bf16 MXU matmul per (image, cout-tile), f32 accumulate; folded BN
        # + ReLU fused before a single lane-dense (full spatial dim) store.
        acc = jnp.dot(w_ref[...], col_ref[...],
                      preferred_element_type=jnp.float32)       # (cout_tile, M) f32
        y = jnp.maximum(acc * sc_ref[...] + b_ref[...], 0.0)
        o_ref[...] = y[None].astype(o_ref.dtype)

    # Scratch: im2col matrix (always) + padded image (only when p > 0).
    scratch = [pltpu.VMEM((Kdim, M), cdt)]
    if p > 0:
        scratch.append(pltpu.VMEM((C_in, H_pad, W_pad), cdt))

    # Explicit scoped-VMEM limit sized from the real (vreg-padded) footprint.
    def _buf_bytes(shape, itemsize):
        sh = list(shape)
        sh[-1] = _round_up(sh[-1], 128)
        if len(sh) >= 2:
            sh[-2] = _round_up(sh[-2], 8)
        n = 1
        for v in sh:
            n *= v
        return n * itemsize

    x_isz = jnp.dtype(x.dtype).itemsize
    c_isz = jnp.dtype(cdt).itemsize
    blocks = (_buf_bytes((1, C_in, H, W), x_isz)
              + _buf_bytes((cout_tile, Kdim), c_isz)
              + 2 * _buf_bytes((cout_tile, 1), 4)
              + _buf_bytes((1, cout_tile, M), x_isz))
    scratch_b = _buf_bytes((Kdim, M), c_isz)
    if p > 0:
        scratch_b += _buf_bytes((C_in, H_pad, W_pad), c_isz)
    vmem_limit = int(1.5 * (2 * blocks + scratch_b)) + (8 << 20)

    out = pl.pallas_call(
        kernel,
        out_shape=jax.ShapeDtypeStruct((N, C_out_pad, M), x.dtype),
        grid_spec=pltpu.PrefetchScalarGridSpec(
            num_scalar_prefetch=0,
            grid=grid,
            in_specs=[
                pl.BlockSpec((1, C_in, H, W), lambda n, j: (n, 0, 0, 0)),
                pl.BlockSpec((cout_tile, Kdim), lambda n, j: (j, 0)),
                pl.BlockSpec((cout_tile, 1), lambda n, j: (j, 0)),
                pl.BlockSpec((cout_tile, 1), lambda n, j: (j, 0)),
            ],
            out_specs=pl.BlockSpec((1, cout_tile, M), lambda n, j: (n, j, 0)),
            scratch_shapes=scratch,
        ),
        compiler_params=pltpu.CompilerParams(
            dimension_semantics=("parallel", "arbitrary"),
            vmem_limit_bytes=vmem_limit),
    )(x, w2, scale2, bias2)

    out = out.reshape(N, C_out_pad, H_out, W_out)   # cheap reshape, already NCHW
    if C_out_pad != C_out:
        out = out[:, :C_out]
    return out


if __name__ == "__main__":
    key = jax.random.PRNGKey(0)
    k1, k2 = jax.random.split(key)

    # Small shapes consistent with ConvBR: N=2, Cin=4, H=W=16, Cout=16, 3x3, pad=1.
    N, C_in, H, W = 2, 4, 16, 16
    C_out, K = 16, 3
    stride, padding, dilation = 1, 1, 1
    eps = 1e-5

    x = jax.random.normal(k1, (N, C_in, H, W), dtype=jnp.float32)
    # nn.init.kaiming_normal_(weight, a=1): std = sqrt(2/(1+a^2))/sqrt(fan_in) = 1/sqrt(fan_in)
    fan_in = C_in * K * K
    w = jax.random.normal(k2, (C_out, C_in, K, K), dtype=jnp.float32) / jnp.sqrt(fan_in)

    # Round inputs/weights to bf16-representable f32 so the explicit bf16 MXU
    # path (bf16 multiplies, f32 accumulate) and the XLA reference agree tightly.
    x = x.astype(jnp.bfloat16).astype(jnp.float32)
    w = w.astype(jnp.bfloat16).astype(jnp.float32)

    # Freshly-initialized BatchNorm2d parameters / running stats (eval mode).
    gamma = jnp.ones((C_out,), jnp.float32)
    beta = jnp.zeros((C_out,), jnp.float32)
    r_mean = jnp.zeros((C_out,), jnp.float32)
    r_var = jnp.ones((C_out,), jnp.float32)

    out = conv_br(x, w, gamma, beta, r_mean, r_var,
                  stride=stride, padding=padding, dilation=dilation, eps=eps)
    out = jax.block_until_ready(out)

    # Reference: XLA conv + eval-mode BN + ReLU.
    y = jax.lax.conv_general_dilated(
        x, w, window_strides=(stride, stride),
        padding=((padding, padding), (padding, padding)),
        rhs_dilation=(dilation, dilation),
        dimension_numbers=("NCHW", "OIHW", "NCHW"))
    scale = gamma / jnp.sqrt(r_var + eps)
    bias = beta - r_mean * scale
    ref = jnp.maximum(y * scale[None, :, None, None] + bias[None, :, None, None], 0.0)

    assert out.shape == ref.shape and out.dtype == ref.dtype
    max_err = float(jnp.max(jnp.abs(out - ref)))
    assert jnp.allclose(out, ref, atol=2e-3, rtol=2e-3), f"max abs err = {max_err}"

    print("KERNEL_OK")
</pallas_src>

<mosaic_0001>
module attributes {stable_mosaic.version = 11 : i64} {
  func.func @kernel(%arg0: i32, %arg1: i32, %arg2: memref<1x4x16x16xf32, #tpu.memory_space<vmem>>, %arg3: memref<16x72xbf16, #tpu.memory_space<vmem>>, %arg4: memref<16x1xf32, #tpu.memory_space<vmem>>, %arg5: memref<16x1xf32, #tpu.memory_space<vmem>>, %arg6: memref<1x16x256xf32, #tpu.memory_space<vmem>>, %arg7: memref<72x256xbf16, #tpu.memory_space<vmem>>, %arg8: memref<4x18x18xbf16, #tpu.memory_space<vmem>>) attributes {dimension_semantics = [#tpu.dimension_semantics<parallel>, #tpu.dimension_semantics<arbitrary>], iteration_bounds = array<i64: 2, 1>, scalar_prefetch = 0 : i64, scratch_operands = 2 : i64, tpu.core_type = #tpu.core_type<tc>, window_params = [{transform_indices = @transform_0, window_bounds = array<i64: 1, 4, 16, 16>}, {transform_indices = @transform_1, window_bounds = array<i64: 16, 72>}, {transform_indices = @transform_2, window_bounds = array<i64: 16, 1>}, {transform_indices = @transform_3, window_bounds = array<i64: 16, 1>}, {transform_indices = @transform_4, window_bounds = array<i64: 1, 16, 256>}]} {
    %c0_i32 = arith.constant 0 : i32
    %0 = arith.cmpi eq, %arg1, %c0_i32 : i32
    %1 = arith.extui %0 : i1 to i32
    %c0_i32_0 = arith.constant 0 : i32
    %2 = arith.cmpi ne, %1, %c0_i32_0 : i32
    scf.if %2 {
      %cst_12 = arith.constant 0.000000e+00 : bf16
      %16 = vector.broadcast %cst_12 : bf16 to vector<4x1x18xbf16>
      %cst_13 = arith.constant 0.000000e+00 : bf16
      %17 = vector.broadcast %cst_13 : bf16 to vector<4x18x1xbf16>
      %c0_14 = arith.constant 0 : index
      %c0_15 = arith.constant 0 : index
      %c0_16 = arith.constant 0 : index
      %18 = vector.load %arg8[%c0_14, %c0_15, %c0_16] : memref<4x18x18xbf16, #tpu.memory_space<vmem>>, vector<4x1x18xbf16>
      tpu.vector_store %arg8[%c0_14, %c0_15, %c0_16], %16 {strides = array<i32>} : memref<4x18x18xbf16, #tpu.memory_space<vmem>>, vector<4x1x18xbf16>,
      %c0_17 = arith.constant 0 : index
      %c17 = arith.constant 17 : index
      %c0_18 = arith.constant 0 : index
      %19 = vector.load %arg8[%c0_17, %c17, %c0_18] : memref<4x18x18xbf16, #tpu.memory_space<vmem>>, vector<4x1x18xbf16>
      tpu.vector_store %arg8[%c0_17, %c17, %c0_18], %16 {strides = array<i32>} : memref<4x18x18xbf16, #tpu.memory_space<vmem>>, vector<4x1x18xbf16>,
      %c0_19 = arith.constant 0 : index
      %c0_20 = arith.constant 0 : index
      %c0_21 = arith.constant 0 : index
      %20 = vector.load %arg8[%c0_19, %c0_20, %c0_21] : memref<4x18x18xbf16, #tpu.memory_space<vmem>>, vector<4x18x1xbf16>
      tpu.vector_store %arg8[%c0_19, %c0_20, %c0_21], %17 {strides = array<i32>} : memref<4x18x18xbf16, #tpu.memory_space<vmem>>, vector<4x18x1xbf16>,
      %c0_22 = arith.constant 0 : index
      %c0_23 = arith.constant 0 : index
      %c17_24 = arith.constant 17 : index
      %21 = vector.load %arg8[%c0_22, %c0_23, %c17_24] : memref<4x18x18xbf16, #tpu.memory_space<vmem>>, vector<4x18x1xbf16>
      tpu.vector_store %arg8[%c0_22, %c0_23, %c17_24], %17 {strides = array<i32>} : memref<4x18x18xbf16, #tpu.memory_space<vmem>>, vector<4x18x1xbf16>,
      %c0_25 = arith.constant 0 : index
      %c0_26 = arith.constant 0 : index
      %c0_27 = arith.constant 0 : index
      %c0_28 = arith.constant 0 : index
      %22 = vector.load %arg2[%c0_25, %c0_26, %c0_27, %c0_28] : memref<1x4x16x16xf32, #tpu.memory_space<vmem>>, vector<1x4x16x16xf32>
      %23 = vector.shape_cast %22 : vector<1x4x16x16xf32> to vector<4x16x16xf32>
      %24 = arith.truncf %23 : vector<4x16x16xf32> to vector<4x16x16xbf16>
      %c0_29 = arith.constant 0 : index
      %c1 = arith.constant 1 : index
      %c1_30 = arith.constant 1 : index
      %25 = vector.load %arg8[%c0_29, %c1, %c1_30] : memref<4x18x18xbf16, #tpu.memory_space<vmem>>, vector<4x16x16xbf16>
      tpu.vector_store %arg8[%c0_29, %c1, %c1_30], %24 {strides = array<i32>} : memref<4x18x18xbf16, #tpu.memory_space<vmem>>, vector<4x16x16xbf16>,
      %cst_31 = arith.constant 0.000000e+00 : bf16
      %26 = vector.broadcast %cst_31 : bf16 to vector<72x256xbf16>
      %c0_32 = arith.constant 0 : index
      %c0_33 = arith.constant 0 : index
      %27 = vector.load %arg7[%c0_32, %c0_33] : memref<72x256xbf16, #tpu.memory_space<vmem>>, vector<72x256xbf16>
      tpu.vector_store %arg7[%c0_32, %c0_33], %26 {strides = array<i32>} : memref<72x256xbf16, #tpu.memory_space<vmem>>, vector<72x256xbf16>,
      %c0_34 = arith.constant 0 : index
      %c0_35 = arith.constant 0 : index
      %c0_36 = arith.constant 0 : index
      %28 = vector.load %arg8[%c0_34, %c0_35, %c0_36] : memref<4x18x18xbf16, #tpu.memory_space<vmem>>, vector<4x16x16xbf16>
      %29 = vector.shape_cast %28 : vector<4x16x16xbf16> to vector<4x256xbf16>
      %c0_37 = arith.constant 0 : index
      %c0_38 = arith.constant 0 : index
      %30 = vector.load %arg7[%c0_37, %c0_38] : memref<72x256xbf16, #tpu.memory_space<vmem>>, vector<4x256xbf16>
      tpu.vector_store %arg7[%c0_37, %c0_38], %29 {strides = array<i32>} : memref<72x256xbf16, #tpu.memory_space<vmem>>, vector<4x256xbf16>,
      %c0_39 = arith.constant 0 : index
      %c0_40 = arith.constant 0 : index
      %c1_41 = arith.constant 1 : index
      %31 = vector.load %arg8[%c0_39, %c0_40, %c1_41] : memref<4x18x18xbf16, #tpu.memory_space<vmem>>, vector<4x16x16xbf16>
      %32 = vector.shape_cast %31 : vector<4x16x16xbf16> to vector<4x256xbf16>
      %c8 = arith.constant 8 : index
      %c0_42 = arith.constant 0 : index
      %33 = vector.load %arg7[%c8, %c0_42] : memref<72x256xbf16, #tpu.memory_space<vmem>>, vector<4x256xbf16>
      tpu.vector_store %arg7[%c8, %c0_42], %32 {strides = array<i32>} : memref<72x256xbf16, #tpu.memory_space<vmem>>, vector<4x256xbf16>,
      %c0_43 = arith.constant 0 : index
      %c0_44 = arith.constant 0 : index
      %c2 = arith.constant 2 : index
      %34 = vector.load %arg8[%c0_43, %c0_44, %c2] : memref<4x18x18xbf16, #tpu.memory_space<vmem>>, vector<4x16x16xbf16>
      %35 = vector.shape_cast %34 : vector<4x16x16xbf16> to vector<4x256xbf16>
      %c16 = arith.constant 16 : index
      %c0_45 = arith.constant 0 : index
      %36 = vector.load %arg7[%c16, %c0_45] : memref<72x256xbf16, #tpu.memory_space<vmem>>, vector<4x256xbf16>
      tpu.vector_store %arg7[%c16, %c0_45], %35 {strides = array<i32>} : memref<72x256xbf16, #tpu.memory_space<vmem>>, vector<4x256xbf16>,
      %c0_46 = arith.constant 0 : index
      %c1_47 = arith.constant 1 : index
      %c0_48 = arith.constant 0 : index
      %37 = vector.load %arg8[%c0_46, %c1_47, %c0_48] : memref<4x18x18xbf16, #tpu.memory_space<vmem>>, vector<4x16x16xbf16>
      %38 = vector.shape_cast %37 : vector<4x16x16xbf16> to vector<4x256xbf16>
      %c24 = arith.constant 24 : index
      %c0_49 = arith.constant 0 : index
      %39 = vector.load %arg7[%c24, %c0_49] : memref<72x256xbf16, #tpu.memory_space<vmem>>, vector<4x256xbf16>
      tpu.vector_store %arg7[%c24, %c0_49], %38 {strides = array<i32>} : memref<72x256xbf16, #tpu.memory_space<vmem>>, vector<4x256xbf16>,
      %c0_50 = arith.constant 0 : index
      %c1_51 = arith.constant 1 : index
      %c1_52 = arith.constant 1 : index
      %40 = vector.load %arg8[%c0_50, %c1_51, %c1_52] : memref<4x18x18xbf16, #tpu.memory_space<vmem>>, vector<4x16x16xbf16>
      %41 = vector.shape_cast %40 : vector<4x16x16xbf16> to vector<4x256xbf16>
      %c32 = arith.constant 32 : index
      %c0_53 = arith.constant 0 : index
      %42 = vector.load %arg7[%c32, %c0_53] : memref<72x256xbf16, #tpu.memory_space<vmem>>, vector<4x256xbf16>
      tpu.vector_store %arg7[%c32, %c0_53], %41 {strides = array<i32>} : memref<72x256xbf16, #tpu.memory_space<vmem>>, vector<4x256xbf16>,
      %c0_54 = arith.constant 0 : index
      %c1_55 = arith.constant 1 : index
      %c2_56 = arith.constant 2 : index
      %43 = vector.load %arg8[%c0_54, %c1_55, %c2_56] : memref<4x18x18xbf16, #tpu.memory_space<vmem>>, vector<4x16x16xbf16>
      %44 = vector.shape_cast %43 : vector<4x16x16xbf16> to vector<4x256xbf16>
      %c40 = arith.constant 40 : index
      %c0_57 = arith.constant 0 : index
      %45 = vector.load %arg7[%c40, %c0_57] : memref<72x256xbf16, #tpu.memory_space<vmem>>, vector<4x256xbf16>
      tpu.vector_store %arg7[%c40, %c0_57], %44 {strides = array<i32>} : memref<72x256xbf16, #tpu.memory_space<vmem>>, vector<4x256xbf16>,
      %c0_58 = arith.constant 0 : index
      %c2_59 = arith.constant 2 : index
      %c0_60 = arith.constant 0 : index
      %46 = vector.load %arg8[%c0_58, %c2_59, %c0_60] : memref<4x18x18xbf16, #tpu.memory_space<vmem>>, vector<4x16x16xbf16>
      %47 = vector.shape_cast %46 : vector<4x16x16xbf16> to vector<4x256xbf16>
      %c48 = arith.constant 48 : index
      %c0_61 = arith.constant 0 : index
      %48 = vector.load %arg7[%c48, %c0_61] : memref<72x256xbf16, #tpu.memory_space<vmem>>, vector<4x256xbf16>
      tpu.vector_store %arg7[%c48, %c0_61], %47 {strides = array<i32>} : memref<72x256xbf16, #tpu.memory_space<vmem>>, vector<4x256xbf16>,
      %c0_62 = arith.constant 0 : index
      %c2_63 = arith.constant 2 : index
      %c1_64 = arith.constant 1 : index
      %49 = vector.load %arg8[%c0_62, %c2_63, %c1_64] : memref<4x18x18xbf16, #tpu.memory_space<vmem>>, vector<4x16x16xbf16>
      %50 = vector.shape_cast %49 : vector<4x16x16xbf16> to vector<4x256xbf16>
      %c56 = arith.constant 56 : index
      %c0_65 = arith.constant 0 : index
      %51 = vector.load %arg7[%c56, %c0_65] : memref<72x256xbf16, #tpu.memory_space<vmem>>, vector<4x256xbf16>
      tpu.vector_store %arg7[%c56, %c0_65], %50 {strides = array<i32>} : memref<72x256xbf16, #tpu.memory_space<vmem>>, vector<4x256xbf16>,
      %c0_66 = arith.constant 0 : index
      %c2_67 = arith.constant 2 : index
      %c2_68 = arith.constant 2 : index
      %52 = vector.load %arg8[%c0_66, %c2_67, %c2_68] : memref<4x18x18xbf16, #tpu.memory_space<vmem>>, vector<4x16x16xbf16>
      %53 = vector.shape_cast %52 : vector<4x16x16xbf16> to vector<4x256xbf16>
      %c64 = arith.constant 64 : index
      %c0_69 = arith.constant 0 : index
      %54 = vector.load %arg7[%c64, %c0_69] : memref<72x256xbf16, #tpu.memory_space<vmem>>, vector<4x256xbf16>
      tpu.vector_store %arg7[%c64, %c0_69], %53 {strides = array<i32>} : memref<72x256xbf16, #tpu.memory_space<vmem>>, vector<4x256xbf16>,
    } else {
    }
    %c0 = arith.constant 0 : index
    %c0_1 = arith.constant 0 : index
    %3 = vector.load %arg3[%c0, %c0_1] : memref<16x72xbf16, #tpu.memory_space<vmem>>, vector<16x72xbf16>
    %c0_2 = arith.constant 0 : index
    %c0_3 = arith.constant 0 : index
    %4 = vector.load %arg7[%c0_2, %c0_3] : memref<72x256xbf16, #tpu.memory_space<vmem>>, vector<72x256xbf16>
    %cst = arith.constant dense<0.000000e+00> : vector<16x256xf32>
    %5 = tpu.matmul %3, %4, %cst {dimension_numbers = #tpu.dot_dimension_numbers<[1], [0], [0], [1], [0, 0, 1, 1], [], []>} : vector<16x72xbf16>, vector<72x256xbf16>, vector<16x256xf32> -> vector<16x256xf32>
    %c0_4 = arith.constant 0 : index
    %c0_5 = arith.constant 0 : index
    %6 = vector.load %arg4[%c0_4, %c0_5] : memref<16x1xf32, #tpu.memory_space<vmem>>, vector<16x1xf32>
    %7 = vector.broadcast %6 : vector<16x1xf32> to vector<16x256xf32>
    %8 = arith.mulf %5, %7 : vector<16x256xf32>
    %c0_6 = arith.constant 0 : index
    %c0_7 = arith.constant 0 : index
    %9 = vector.load %arg5[%c0_6, %c0_7] : memref<16x1xf32, #tpu.memory_space<vmem>>, vector<16x1xf32>
    %10 = vector.broadcast %9 : vector<16x1xf32> to vector<16x256xf32>
    %11 = arith.addf %8, %10 : vector<16x256xf32>
    %cst_8 = arith.constant 0.000000e+00 : f32
    %12 = vector.broadcast %cst_8 : f32 to vector<16x256xf32>
    %13 = arith.maximumf %11, %12 : vector<16x256xf32>
    %14 = vector.shape_cast %13 : vector<16x256xf32> to vector<1x16x256xf32>
    %c0_9 = arith.constant 0 : index
    %c0_10 = arith.constant 0 : index
    %c0_11 = arith.constant 0 : index
    %15 = vector.load %arg6[%c0_9, %c0_10, %c0_11] : memref<1x16x256xf32, #tpu.memory_space<vmem>>, vector<1x16x256xf32>
    tpu.vector_store %arg6[%c0_9, %c0_10, %c0_11], %14 {strides = array<i32>} : memref<1x16x256xf32, #tpu.memory_space<vmem>>, vector<1x16x256xf32>,
    return
  }
  func.func @transform_0(%arg0: i32, %arg1: i32) -> (i32, i32, i32, i32) {
    %c0_i32 = arith.constant 0 : i32
    %c0_i32_0 = arith.constant 0 : i32
    %c0_i32_1 = arith.constant 0 : i32
    %c0_i32_2 = arith.constant 0 : i32
    return %arg0, %c0_i32, %c0_i32_0, %c0_i32_1 : i32, i32, i32, i32
  }
  func.func @transform_1(%arg0: i32, %arg1: i32) -> (i32, i32) {
    %c0_i32 = arith.constant 0 : i32
    %c0_i32_0 = arith.constant 0 : i32
    return %arg1, %c0_i32 : i32, i32
  }
  func.func @transform_2(%arg0: i32, %arg1: i32) -> (i32, i32) {
    %c0_i32 = arith.constant 0 : i32
    %c0_i32_0 = arith.constant 0 : i32
    return %arg1, %c0_i32 : i32, i32
  }
  func.func @transform_3(%arg0: i32, %arg1: i32) -> (i32, i32) {
    %c0_i32 = arith.constant 0 : i32
    %c0_i32_0 = arith.constant 0 : i32
    return %arg1, %c0_i32 : i32, i32
  }
  func.func @transform_4(%arg0: i32, %arg1: i32) -> (i32, i32, i32) {
    %c0_i32 = arith.constant 0 : i32
    %c0_i32_0 = arith.constant 0 : i32
    return %arg0, %arg1, %c0_i32 : i32, i32, i32
  }
}

</mosaic_0001>

<bundles_post_ra>
// kernel: tpu_custom_call.1
= control target key start
LH: loop header
LB: loop body
LE: loop exit
PB: predicated region body
PF: predicated region fallthrough
CT: control target
= control target key end

     0   :  { %9 = vsyncpa [#allocation5], 0  ;;  %s6289_s0 = inlined_call_operand.hbm [shape: f32[2,4,16,16], index: 0, kind: input, shape index: {}]   ;;  %s6290_s1 = inlined_call_operand.vmem [shape: bf16[16,72], index: 1, kind: input, shape index: {}]   ;;  %s6291_s2 = inlined_call_operand.vmem [shape: f32[16,1], index: 2, kind: input, shape index: {}]   ;;  %s6292_s3 = inlined_call_operand.vmem [shape: f32[16,1], index: 3, kind: input, shape index: {}]   ;;  %s6293_s4 = inlined_call_operand.hbm [shape: f32[2,16,256], index: 4, kind: output, shape index: {}]  }
   0x1   :  { %11 = vsyncpa [#allocation5 + $0x1], 0 }
   0x2   :  { %12 = vsyncpa [#allocation6], 0 }
   0x3   :  { %14 = vsyncpa [#allocation6 + $0x1], 0  ;;  %s4388_s15 = smov 0   ;;  %s4390_s16 = smov 0  }
   0x4   :  { %s4392_s17 = smov 0   ;;  %s4394_s18 = smov 0  }
   0x5   :  { %s4396_s19 = smov 0   ;;  %s4398_s20 = smov 0  }
   0x6 LB: > { %s3872_s21 = sadd.s32 4294967295, %s4343_s20   ;;  %s3873_s22 = sadd.s32 4294967294, %s4343_s20   ;;  %s4343_s20 = sphi %s4398_s20, %s20_s20   ;;  %s4339_s19 = sphi %s4396_s19, %s6427_s19   ;;  %s4335_s18 = sphi %s4394_s18, %s6426_s18   ;;  %s4331_s17 = sphi %s4392_s17, %s6425_s17   ;;  %s4327_s16 = sphi %s4390_s16, %s6424_s16   ;;  %s4323_s15 = sphi %s4388_s15, %s6423_s15  }
   0x7   : > { %s32_s23 = sadd.s32 1, %s4339_s19  ;;  %s39_s24 = sadd.s32 1, %s4331_s17 }
   0x8   : > { %p34_p0 = scmp.ge.s32.totalorder %s32_s23, 2  ;;  %p46_p1 = scmp.ne.s32.totalorder %s4331_s17, %s4327_s16 }
   0x9   : > { %p47_p2 = scmp.eq.s32.totalorder %s4343_s20, 0  ;;  %p52_p3 = scmp.ne.s32.totalorder %s4327_s16, %s4323_s15 }
   0xa   : > { %s6429_s23 = smov (%p34_p0, %s32_s23), 0  ;;  %p53_p5 = scmp.eq.s32.totalorder %s3872_s21, 0 }
   0xb   : > { %p4429_p4 = por %p47_p2, %p46_p1  ;;  %s36_s26 = ssub.s32 %s4339_s19, %s6429_s23 }
   0xc   : > { %p156_p6 = scmp.eq.s32.totalorder %s3872_s21, 1  ;;  %p37_p7 = scmp.eq.s32.totalorder %s36_s26, 0 }
   0xd   : > { %p4435_p8 = por %p53_p5, %p52_p3  ;;  %p162_p10 = scmp.eq.s32.totalorder %s3873_s22, 1 }
   0xe   : > { %p4439_p9 = por %p156_p6, %p46_p1  ;;  %p4152_p13 = scmp.lt.s32.totalorder %s4343_s20, 2 }
   0xf   : > { %s4444_s29 = scalar_select %p37_p7, %s4331_s17, %s39_s24  }
  0x10   : > { %p4446_p11 = por %p162_p10, %p52_p3  ;;  %s209_s5 = sand.u32 1, %s4331_s17  }
  0x11   : > { %s3879_s6 = sshll.u32 %s209_s5, 6  ;;  %s4058_s7 = sshll.u32 %s4339_s19, 10 }
  0x12   : > { %s219_s10 = scalar_lea.hbm %s6289_s0, %s4058_s7  ;;  %s213_s11 = scalar_lea.vmem [#allocation4], %s3879_s6 }
  0x13   : > { %s220_s12 = sshll.u32 %s213_s11, 4  ;;  %p4459_p0 = pnand %p4152_p13, %p4429_p4  ;;  %s221_s12 = int_to_ptr.vmem [resolvable:$true] %s220_s12 }
  0x14   : > { %p3882_p1 = scmp.ge.s32.totalorder %s4343_s20, 1  ;;  %s210_s14 = scalar_lea.sflag [#allocation5], %s209_s5 }
  0x15   : > { %p4237_p2 = pneg %p4459_p0  ;;  %s4248_s21 = scalar_lea.vmem %s221_s12, 1024 }
  0x16   : > { %p4249_p3 = scmp.ne.s32.totalorder %s221_s12, %s4248_s21  ;;  %s4345_s22 = smov [#allocation4]  }
  0x17   : > { %s4253_s24 = sshll.u32 %s4345_s22, 4  ;;  %s4254_s24 = int_to_ptr.vmem [resolvable:$false] %s4253_s24 }
  0x18   : > { %p4251_p5 = pnand %p4249_p3, %p4237_p2  ;;  %s4255_s26 = scalar_lea.vmem %s4254_s24, 2048 }
  0x19   : > { %p4256_p7 = scmp.lt.s32.totalorder %s221_s12, %s4254_s24  ;;  %p4257_p10 = scmp.lt.s32.totalorder %s4255_s26, %s4248_s21 }
  0x1a   : > { %p4252_p6 = pneg %p4251_p5 }
  0x1b   : > { %p4258_p12 = por %p4257_p10, %p4256_p7 }
  0x1d   : > { %p4259_p4 = pnand %p4258_p12, %p4252_p6 }
  0x1f   : > { %4262 = shalt.err (!%p4259_p4)
}
  0x20   : > { %s4346_s25 = smov 128   ;;  %s4347_s5 = smov 8  }
  0x21   : > { %4147 = dma.hbm_to_vmem [thread:$0]  (!%p4459_p0), %s219_s10, 1024, %s221_s12, %s210_s14, %s4346_s25, %s4346_s25, %s4347_s5  }
  0x22   : > { %p228_p13 = scmp.lt.s32.totalorder %s4343_s20, 3 }
  0x24   : > { %p229_p2 = pnand %p3882_p1, %p228_p13 }
  0x26   : > { %232 = sbr.rel (%p229_p2) target bundleno = 917 (0x395), region = 36 }
  0x2b   : > { %s4472_s6 = sand.u32 1, %s4327_s16  }
  0x2c   : > { %s3883_s7 = sshll.u32 %s4472_s6, 6  ;;  %s235_s8 = scalar_lea.sflag [#allocation5], %s4472_s6 }
  0x2d   : > { %s4476_s9 = scalar_lea.vmem [#allocation4], %s3883_s7 }
  0x2e   : > { %4314 = dma.done.wait (%p4435_p8), %s235_s8, 1024  }
  0x2f   : > { %4316 = vsyncadd (%p4435_p8), %s235_s8, 4294966272  ;;  %v4348_v0 = vmov 0   ;;  %vm331_vm0 = vcmask 3072   ;;  %vm345_vm1 = vcmask 142472   ;;  %v360_v1 = vld [vmem:[%s4476_s9 + $0x8] sm:$0xff]  ;;  %v359_v2 = vld [vmem:[%s4476_s9] sm:$0xff] }
  0x30   : > { %530 = vst [vmem:[#allocation2 + $0x30] sm:$0xff] %v4348_v0  ;;  %531 = vst [vmem:[#allocation2] sm:$0xff] %v4348_v0  ;;  %3675 = vmatprep.mubr.bf16.mxu0 %v4348_v0  ;;  %4219 = vset.pattern.permute.xlu1 %v4348_v0  ;;  %v362_v3 = vld [vmem:[%s4476_s9 + $0x18] sm:$0xff]  ;;  %vm302_vm2 = vcmask 139264   ;;  %v4060_v4 = vpack.c.bf16 %v360_v1, %v360_v1  ;;  %v4059_v5 = vpack.c.bf16 %v359_v2, %v359_v2  ;;  %v361_v7 = vld [vmem:[%s4476_s9 + $0x10] sm:$0xff]  ;;  %s4349_s27 = smov 1  }
  0x31   : > { %532 = vst [vmem:[#allocation2 + $0x18] sm:$0xff] %v4348_v0  ;;  %533 = vst [vmem:[#allocation2 + $0x10] sm:$0xff] %v4348_v0  ;;  %4218 = vset.pattern.permute.xlu0 %v4348_v0  ;;  %v4513_v6 = vpack.c.bf16 %v362_v3, %v362_v3  ;;  %v364_v8 = vld [vmem:[%s4476_s9 + $0x28] sm:$0xff]  ;;  %v363_v9 = vld [vmem:[%s4476_s9 + $0x20] sm:$0xff]  ;;  %vm303_vm3 = vsmask.f32 256  ;;  %v4061_v10 = vpack.c.bf16 %v361_v7, %v361_v7 }
  0x32   : > { %534 = vst [vmem:[#allocation2 + $0x20] sm:$0xff] %v4348_v0  ;;  %535 = vst [vmem:[#allocation2 + $0x28] sm:$0xff] %v4348_v0  ;;  %v4518_v11 = vpack.c.bf16 %v364_v8, %v364_v8  ;;  %v4520_v12 = vpack.c.bf16 %v363_v9, %v363_v9  ;;  %vm317_vm4 = vsmask.f32 7938  ;;  %v402_v13 = vshrl.u32 %v4060_v4, 16  ;;  %v365_v31 = vld [vmem:[%s4476_s9 + $0x30] sm:$0xff] }
  0x33   : > { %536 = vst [vmem:[#allocation2 + $0x40] sm:$0xff] %v4348_v0  ;;  %537 = vst [vmem:[#allocation2 + $0x38] sm:$0xff] %v4348_v0  ;;  %v394_v14 = vshrl.u32 %v4059_v5, 16  ;;  %v397_v15 = vshll.u32 %v4059_v5, 16  ;;  %vm391_vm5 = vsmask.f32 4368  ;;  %v4065_v51 = vpack.c.bf16 %v365_v31, %v365_v31 }
  0x34   : > { %538 = vst [vmem:[#allocation2 + $0x8] sm:$0xff] %v4348_v0  ;;  %333 = vst.msk [vmem:[#allocation3 + $0x4] sm:$0xf] %vm331_vm0, %v4348_v0  ;;  %v419_v16 = vshrl.u32 %v4513_v6, 16  ;;  %v411_v17 = vshrl.u32 %v4061_v10, 16  ;;  %v414_v18 = vshll.u32 %v4061_v10, 16 }
  0x35   : > { %337 = vst.msk [vmem:[#allocation3 + $0x10] sm:$0xf] %vm331_vm0, %v4348_v0  ;;  %340 = vst.msk [vmem:[#allocation3 + $0x1c] sm:$0xf] %vm331_vm0, %v4348_v0  ;;  %v436_v19 = vshrl.u32 %v4518_v11, 16  ;;  %v404_v22 = vrot.slane %v402_v13, 7 }
  0x36   : > { %343 = vst.msk [vmem:[#allocation3 + $0x28] sm:$0xf] %vm331_vm0, %v4348_v0  ;;  %v305_v20 = vld [vmem:[#allocation3] sm:$0x1]  ;;  %v308_v21 = vld [vmem:[#allocation3 + $0xc] sm:$0x1]  ;;  %vm4533_vm6 = vmand %vm302_vm2, %vm303_vm3 }
  0x37   : > { %347 = vst.msk [vmem:[#allocation3 + $0x4] sm:$0xf] %vm345_vm1, %v4348_v0  ;;  %351 = vst.msk [vmem:[#allocation3 + $0x10] sm:$0xf] %vm345_vm1, %v4348_v0  ;;  %v4524_v23 = vrot.slane %v394_v14, 7  ;;  %v428_v24 = vshrl.u32 %v4520_v12, 16 }
  0x38   : > { %354 = vst.msk [vmem:[#allocation3 + $0x1c] sm:$0xf] %vm345_vm1, %v4348_v0  ;;  %357 = vst.msk [vmem:[#allocation3 + $0x28] sm:$0xf] %vm345_vm1, %v4348_v0  ;;  %v311_v25 = vld [vmem:[#allocation3 + $0x18] sm:$0x1] }
  0x39   : > { %v405_v26 = vshll.u32 %v4060_v4, 16  ;;  %v4527_v27 = vrot.slane %v419_v16, 7  ;;  %v4529_v28 = vrot.slane %v411_v17, 7  ;;  %v314_v30 = vld [vmem:[#allocation3 + $0x24] sm:$0x1]  ;;  %v409_v32 = vrot.slane %v404_v22, 4  ;;  %vm4550_vm7 = vmand %vm302_vm2, %vm317_vm4 }
  0x3a   : > { %v399_v33 = vor.u32 %v397_v15, %v4524_v23  ;;  %v4539_v34 = vrot.slane %v436_v19, 7  ;;  %v431_v35 = vshll.u32 %v4520_v12, 16  ;;  %v366_v36 = vld [vmem:[%s4476_s9 + $0x38] sm:$0xff]  ;;  %v439_v40 = vshll.u32 %v4518_v11, 16  ;;  %v322_v41 = vld [vmem:[#allocation3 + $0x14] sm:$0x1]  ;;  %vm4591_vm10 = vmor %vm303_vm3, %vm391_vm5 }
  0x3b   : > { %v319_v37 = vld [vmem:[#allocation3 + $0x8] sm:$0x1]  ;;  %v426_v38 = vrot.slane %v4527_v27, 4  ;;  %v416_v39 = vor.u32 %v414_v18, %v4529_v28  ;;  %v325_v42 = vld [vmem:[#allocation3 + $0x20] sm:$0x1]  ;;  %465 = vrot.lane.b32.xlu1 %v409_v32, %s4349_s27  ;;  %v430_v43 = vrot.slane %v428_v24, 7  ;;  %v407_v49 = vor.u32 %v405_v26, %v404_v22 }
  0x3c   : > { %461 = vrot.lane.b32.xlu0 %v399_v33, %s4349_s27  ;;  %v306_v45 = vsel %vm4533_vm6, 0, %v305_v20  ;;  %v309_v46 = vsel %vm4533_vm6, 0, %v308_v21  ;;  %v312_v47 = vsel %vm4533_vm6, 0, %v311_v25  ;;  %v315_v48 = vsel %vm4533_vm6, 0, %v314_v30  ;;  %v328_v53 = vld [vmem:[#allocation3 + $0x2c] sm:$0x1] }
  0x3d   : > { %307 = vst [vmem:[#allocation3] sm:$0x1] %v306_v45  ;;  %310 = vst [vmem:[#allocation3 + $0xc] sm:$0x1] %v309_v46  ;;  %vm334_vm8 = vcmask 0   ;;  %vm348_vm9 = vcmask 139400   ;;  %v4066_v52 = vpack.c.bf16 %v366_v36, %v366_v36  ;;  %v433_v58 = vor.u32 %v431_v35, %v430_v43 }
  0x3e   : > { %313 = vst [vmem:[#allocation3 + $0x18] sm:$0x1] %v312_v47  ;;  %v400_v50 = vrot.slane %v4524_v23, 4  ;;  %316 = vst [vmem:[#allocation3 + $0x24] sm:$0x1] %v315_v48  ;;  %v443_v54 = vrot.slane %v4539_v34, 4  ;;  %v441_v59 = vor.u32 %v439_v40, %v4539_v34 }
  0x3f   : > { %332 = vst.msk [vmem:[#allocation3] sm:$0xf] %vm331_vm0, %v4348_v0  ;;  %336 = vst.msk [vmem:[#allocation3 + $0xc] sm:$0xf] %vm331_vm0, %v4348_v0  ;;  %v320_v55 = vsel %vm4550_vm7, 0, %v319_v37  ;;  %v323_v56 = vsel %vm4550_vm7, 0, %v322_v41  ;;  %471 = vrot.lane.b32.xlu1 %v426_v38, %s4349_s27 }
  0x40   : > { %339 = vst.msk [vmem:[#allocation3 + $0x18] sm:$0xf] %vm331_vm0, %v4348_v0  ;;  %342 = vst.msk [vmem:[#allocation3 + $0x24] sm:$0xf] %vm331_vm0, %v4348_v0  ;;  %v326_v57 = vsel %vm4550_vm7, 0, %v325_v42  ;;  %467 = vrot.lane.b32.xlu0 %v416_v39, %s4349_s27  ;;  %v445_v60 = vshrl.u32 %v4065_v51, 16 }
  0x41   : > { %346 = vst.msk [vmem:[#allocation3] sm:$0xf] %vm345_vm1, %v4348_v0  ;;  %350 = vst.msk [vmem:[#allocation3 + $0xc] sm:$0xf] %vm345_vm1, %v4348_v0  ;;  %v453_v61 = vshrl.u32 %v4066_v52, 16  ;;  %v434_v63 = vrot.slane %v430_v43, 4 }
  0x42   : > { %353 = vst.msk [vmem:[#allocation3 + $0x18] sm:$0xf] %vm345_vm1, %v4348_v0  ;;  %321 = vst [vmem:[#allocation3 + $0x8] sm:$0x1] %v320_v55  ;;  %v456_v1 = vshll.u32 %v4066_v52, 16  ;;  %v422_v2 = vshll.u32 %v4513_v6, 16  ;;  %v408_v6 = vsel %vm4591_vm10, %v400_v50, %v407_v49 }
  0x43   : > { %324 = vst [vmem:[#allocation3 + $0x14] sm:$0x1] %v323_v56  ;;  %356 = vst.msk [vmem:[#allocation3 + $0x24] sm:$0xf] %vm345_vm1, %v4348_v0  ;;  %v329_v3 = vsel %vm4550_vm7, 0, %v328_v53  ;;  %v447_v4 = vrot.slane %v445_v60, 7  ;;  %477 = vrot.lane.b32.xlu1 %v443_v54, %s4349_s27  ;;  %v442_v8 = vsel %vm4591_vm10, %v434_v63, %v441_v59 }
  0x44   : > { %327 = vst [vmem:[#allocation3 + $0x20] sm:$0x1] %v326_v57  ;;  %335 = vst.msk [vmem:[#allocation3 + $0x8] sm:$0x1] %vm334_vm8, %v4348_v0  ;;  %v455_v5 = vrot.slane %v453_v61, 7  ;;  %473 = vrot.lane.b32.xlu0 %v433_v58, %s4349_s27  ;;  %v417_v7 = vrot.slane %v4529_v28, 4  ;;  %v424_v11 = vor.u32 %v422_v2, %v4527_v27 }
  0x45   : > { %338 = vst.msk [vmem:[#allocation3 + $0x14] sm:$0x1] %vm334_vm8, %v4348_v0  ;;  %341 = vst.msk [vmem:[#allocation3 + $0x20] sm:$0x1] %vm334_vm8, %v4348_v0  ;;  %v451_v9 = vrot.slane %v447_v4, 4  ;;  %v448_v12 = vshll.u32 %v4065_v51, 16  ;;  %v575_v51 = vlaneseq }
  0x46   : > { %349 = vst.msk [vmem:[#allocation3 + $0x8] sm:$0x1] %vm348_vm9, %v4348_v0  ;;  %352 = vst.msk [vmem:[#allocation3 + $0x14] sm:$0x1] %vm348_vm9, %v4348_v0  ;;  %v458_v10 = vor.u32 %v456_v1, %v455_v5  ;;  %v425_v14 = vsel %vm4591_vm10, %v417_v7, %v424_v11  ;;  %vm504_vm11 = vcmask 131080   ;;  %vm497_vm12 = vcmask 134152  }
  0x47   : > { %355 = vst.msk [vmem:[#allocation3 + $0x20] sm:$0x1] %vm348_vm9, %v4348_v0  ;;  %330 = vst [vmem:[#allocation3 + $0x2c] sm:$0x1] %v329_v3  ;;  %475 = vrot.lane.b32.xlu1 %v442_v8, %s4349_s27  ;;  %v450_v15 = vor.u32 %v448_v12, %v447_v4  ;;  %s4350_s10 = smov 126   ;;  %vm2603_vm15 = vcmask 1042432  }
  0x48   : > { %344 = vst.msk [vmem:[#allocation3 + $0x2c] sm:$0x1] %vm334_vm8, %v4348_v0  ;;  %463 = vrot.lane.b32.xlu0 %v408_v6, %s4349_s27  ;;  %v459_v13 = vsel %vm4591_vm10, %v451_v9, %v458_v10  ;;  %vm4633_vm13 = vmand %vm504_vm11, %vm303_vm3  ;;  %v499_v19 = vld [vmem:[#allocation3] sm:$0xf]  ;;  %v509_v25 = vld [vmem:[#allocation3 + $0xc] sm:$0xf] }
  0x49   : > { %358 = vst.msk [vmem:[#allocation3 + $0x2c] sm:$0x1] %vm348_vm9, %v4348_v0  ;;  %v460_v0 = vrot.slane %v455_v5, 4  ;;  %vm4639_vm14 = vmand %vm497_vm12, %vm317_vm4  ;;  %v516_v31 = vld [vmem:[#allocation3 + $0x18] sm:$0xf]  ;;  %vm2604_vm0 = vcmask 1046532  }
  0x4a   : > { %v523_v44 = vld [vmem:[#allocation3 + $0x24] sm:$0xf]  ;;  %v4674_v59 = vshrl.u32 %v575_v51, 7  ;;  %v4352_v18 = vmov 1934713408   ;;  %s4353_s11 = smov 127   ;;  %vm4711_vm1 = vmor %vm2603_vm15, %vm2604_vm0 }
  0x4b   : > { %481 = vrot.lane.b32.xlu1 %v459_v13, %s4349_s27  ;;  %v4351_v13 = vmov 1983009808   ;;  %vm1431_vm2 = vsmask.f32 3328  ;;  %vm1432_vm3 = vsmask.f32 7440 }
  0x4c   : > { %469 = vrot.lane.b32.xlu0 %v425_v14, %s4349_s27  ;;  %v573_v14 = vunpack.c.l.s4 %v4351_v13  ;;  %vm4820_vm4 = vmor %vm1431_vm2, %vm1432_vm3  ;;  %s4354_s12 = smov 32   ;;  %s4355_s13 = smov 64   ;;  %vm777_vm5 = vcmask 130048   ;;  %vm781_vm6 = vcmask 261120   ;;  %vm784_vm7 = vcmask 392192  }
  0x4d   : > { %v506_v17 = vld [vmem:[#allocation3 + $0x8] sm:$0x1]  ;;  %v513_v24 = vld [vmem:[#allocation3 + $0x14] sm:$0x1]  ;;  %s4356_s14 = smov 96   ;;  %s4357_s21 = smov 16  }
  0x4e   : > { %v520_v30 = vld [vmem:[#allocation3 + $0x20] sm:$0x1]  ;;  %s4358_s22 = smov 48   ;;  %s4359_s24 = smov 80   ;;  %vm787_vm8 = vcmask 523264   ;;  %vm790_vm9 = vcmask 654336  }
  0x4f   : > { %483 = vrot.lane.b32.xlu1 %v460_v0, %s4349_s27  ;;  %s4360_s26 = smov 112   ;;  %vm793_vm10 = vcmask 785408   ;;  %vm796_vm11 = vcmask 916480   ;;  %s3727_s8 = scalar_lea.sflag [#allocation6], %s4472_s6 }
  0x50   : > { %479 = vrot.lane.b32.xlu0 %v450_v15, %s4349_s27  ;;  %v527_v43 = vld [vmem:[#allocation3 + $0x2c] sm:$0x1] }
  0xad   : > { %v466_v20 = vpop.permute.xlu1 %465 }
  0xae   : > { %v462_v21 = vpop.permute.xlu0 %461  ;;  %v507_v22 = vsel %vm4633_vm13, %v466_v20, %v506_v17 }
  0xaf   : > { %v500_v23 = vsel %vm4639_vm14, %v462_v21, %v499_v19  ;;  %508 = vst [vmem:[#allocation3 + $0x8] sm:$0x1] %v507_v22  ;;  %v590_v19 = vunpack.c.l.s4 %v4352_v18 }
  0xb0   : > { %501 = vst [vmem:[#allocation3] sm:$0xf] %v500_v23 }
  0xb1   : > { %v472_v26 = vpop.permute.xlu1 %471 }
  0xb2   : > { %v468_v27 = vpop.permute.xlu0 %467  ;;  %v514_v28 = vsel %vm4633_vm13, %v472_v26, %v513_v24 }
  0xb3   : > { %v510_v29 = vsel %vm4639_vm14, %v468_v27, %v509_v25  ;;  %515 = vst [vmem:[#allocation3 + $0x14] sm:$0x1] %v514_v28 }
  0xb4   : > { %511 = vst [vmem:[#allocation3 + $0xc] sm:$0xf] %v510_v29 }
  0xb5   : > { %v478_v32 = vpop.permute.xlu1 %477 }
  0xb6   : > { %v474_v33 = vpop.permute.xlu0 %473  ;;  %v521_v34 = vsel %vm4633_vm13, %v478_v32, %v520_v30  ;;  %v4670_v54 = vld [vmem:[#allocation3 + $0x8] sm:$0x1] }
  0xb7   : > { %v517_v35 = vsel %vm4639_vm14, %v474_v33, %v516_v31  ;;  %v1120_v36 = vld [vmem:[#allocation3] sm:$0xf]  ;;  %522 = vst [vmem:[#allocation3 + $0x20] sm:$0x1] %v521_v34  ;;  %v3265_v61 = vrot.slane %v4670_v54, 5  ;;  %v574_v34 = vunpack.c.0.s8 %v573_v14 }
  0xb8   : > { %518 = vst [vmem:[#allocation3 + $0x18] sm:$0xf] %v517_v35  ;;  %1136 = vrot.lane.b32.xlu0 %v1120_v36, %s4350_s10  ;;  %v1797_v50 = vld [vmem:[#allocation3] sm:$0xf]  ;;  %v4678_v62 = vld [vmem:[#allocation3 + $0x8] sm:$0x1] }
  0xb9   : > { %v476_v37 = vpop.permute.xlu1 %475  ;;  %v4668_v53 = vld [vmem:[#allocation3] sm:$0xe]  ;;  %v1810_v55 = vshrl.u32 %v1797_v50, 16  ;;  %v1813_v56 = vshll.u32 %v1797_v50, 16  ;;  %v1799_v63 = vld [vmem:[#allocation3 + $0x8] sm:$0x1] }
  0xba   : > { %v464_v38 = vpop.permute.xlu0 %463  ;;  %519 = vst.msk [vmem:[#allocation3 + $0x1c] sm:$0xf] %vm497_vm12, %v476_v37  ;;  %v4672_v58 = vld [vmem:[#allocation3] sm:$0xe]  ;;  %v4021_v60 = vrot.slane %v4668_v53, 9  ;;  %v2930_v11 = vrot.slane %v4678_v62, 5 }
  0xbb   : > { %503 = vst.msk [vmem:[#allocation3 + $0x4] sm:$0xf] %vm497_vm12, %v464_v38  ;;  %v1122_v39 = vld [vmem:[#allocation3 + $0xc] sm:$0xf]  ;;  %v1812_v3 = vrot.slane %v1810_v55, 4  ;;  %v1815_v4 = vrot.slane %v1813_v56, 5 }
  0xbc   : > { %1140 = vrot.lane.b32.xlu0 %v1122_v39, %s4350_s10  ;;  %v4681_v2 = vld [vmem:[#allocation3 + $0xc] sm:$0xe]  ;;  %v4684_v6 = vld [vmem:[#allocation3 + $0x14] sm:$0x1]  ;;  %v821_v8 = vld [vmem:[#allocation3] sm:$0xf]  ;;  %v591_v39 = vunpack.c.0.s8 %v590_v19 }
  0xbd   : > { %v482_v40 = vpop.permute.xlu1 %481  ;;  %v4686_v7 = vld [vmem:[#allocation3 + $0xc] sm:$0xe]  ;;  %v4002_v10 = vrot.slane %v4672_v58, 9  ;;  %v4022_v0 = vrot.slane %v4681_v2, 9  ;;  %v4693_v16 = vld [vmem:[#allocation3 + $0x14] sm:$0x1]  ;;  %v1816_v24 = vor.u32 %v1815_v4, %v1812_v3 }
  0xbe   : > { %v470_v41 = vpop.permute.xlu0 %469  ;;  %526 = vst.msk [vmem:[#allocation3 + $0x28] sm:$0xf] %vm497_vm12, %v482_v40  ;;  %v4690_v12 = vld [vmem:[#allocation3 + $0xc] sm:$0xf]  ;;  %v1829_v17 = vshll.u32 %v1799_v63, 16  ;;  %v3272_v20 = vrot.slane %v4684_v6, 5 }
  0xbf   : > { %512 = vst.msk [vmem:[#allocation3 + $0x10] sm:$0xf] %vm497_vm12, %v470_v41  ;;  %v1124_v42 = vld [vmem:[#allocation3 + $0x18] sm:$0xf]  ;;  %v4697_v21 = vld [vmem:[#allocation3 + $0x20] sm:$0x1] }
  0xc0   : > { %1144 = vrot.lane.b32.xlu0 %v1124_v42, %s4350_s10  ;;  %v3242_v15 = vld [vmem:[#allocation3 + $0x18] sm:$0xe]  ;;  %v4003_v22 = vrot.slane %v4686_v7, 9  ;;  %v1834_v28 = vshrl.u32 %v4690_v12, 16  ;;  %v823_v29 = vld [vmem:[#allocation3 + $0xc] sm:$0xf] }
  0xc1   : > { %v484_v45 = vpop.permute.xlu1 %483  ;;  %v1125_v57 = vld [vmem:[#allocation3 + $0x1c] sm:$0xf]  ;;  %v2907_v23 = vld [vmem:[#allocation3 + $0x18] sm:$0xe]  ;;  %v4023_v30 = vrot.slane %v3242_v15, 9  ;;  %v2937_v31 = vrot.slane %v4693_v16, 5 }
  0xc2   : > { %v480_v46 = vpop.permute.xlu0 %479  ;;  %v1121_v47 = vld [vmem:[#allocation3 + $0x4] sm:$0xf]  ;;  %v528_v48 = vsel %vm4633_vm13, %v484_v45, %v527_v43  ;;  %v3243_v26 = vld [vmem:[#allocation3 + $0x1c] sm:$0xf]  ;;  %v4703_v33 = vld [vmem:[#allocation3 + $0x20] sm:$0x1] }
  0xc3   : > { %v524_v49 = vsel %vm4639_vm14, %v480_v46, %v523_v44  ;;  %1138 = vrot.lane.b32.xlu1 %v1121_v47, %s4350_s10  ;;  %529 = vst [vmem:[#allocation3 + $0x2c] sm:$0x1] %v528_v48  ;;  %v3237_v9 = vld [vmem:[#allocation3 + $0x4] sm:$0xf]  ;;  %v2908_v32 = vld [vmem:[#allocation3 + $0x1c] sm:$0xf] }
  0xc4   : > { %525 = vst [vmem:[#allocation3 + $0x24] sm:$0xf] %v524_v49  ;;  %v3262_v25 = vrot.slane %v3237_v9, 5  ;;  %v2902_v27 = vld [vmem:[#allocation3 + $0x4] sm:$0xf]  ;;  %v3279_v37 = vrot.slane %v4697_v21, 5 }
  0xc5   : > { %v1127_v5 = vld [vmem:[#allocation3 + $0x28] sm:$0xf]  ;;  %v822_v35 = vld [vmem:[#allocation3 + $0x4] sm:$0xf]  ;;  %v4706_v38 = vrot.slane %v1829_v17, 5  ;;  %v3276_v41 = vrot.slane %v3243_v26, 5 }
  0xc6   : > { %v1123_v52 = vld [vmem:[#allocation3 + $0x10] sm:$0xf]  ;;  %v2927_v42 = vrot.slane %v2902_v27, 5  ;;  %v4004_v43 = vrot.slane %v2907_v23, 9  ;;  %v1798_v44 = vld [vmem:[#allocation3 + $0x4] sm:$0xf]  ;;  %v3263_v63 = vsel %vm4711_vm1, %v4021_v60, %v3262_v25 }
  0xc7   : > { %1142 = vrot.lane.b32.xlu1 %v1123_v52, %s4350_s10  ;;  %v3240_v36 = vld [vmem:[#allocation3 + $0x10] sm:$0xf]  ;;  %v4715_v45 = vrot.slane %v1816_v24, 4  ;;  %v3264_v46 = vrot.slane %v3262_v25, 4  ;;  %v4718_v47 = vld [vmem:[#allocation3 + $0x28] sm:$0xf]  ;;  %v4738_v13 = vsel %vm4711_vm1, %v4023_v30, %v3276_v41 }
  0xc8   : > { %v2941_v48 = vrot.slane %v2908_v32, 5  ;;  %v2944_v49 = vrot.slane %v4703_v33, 5  ;;  %v4721_v50 = vrot.slane %v1834_v28, 4  ;;  %v824_v51 = vld [vmem:[#allocation3 + $0x10] sm:$0xf]  ;;  %v3269_v52 = vrot.slane %v3240_v36, 5 }
  0xc9   : > { %v3278_v55 = vrot.slane %v3276_v41, 4  ;;  %v2905_v56 = vld [vmem:[#allocation3 + $0x10] sm:$0xf]  ;;  %v1819_v3 = vshll.u32 %v1798_v44, 16  ;;  %v1823_v4 = vshrl.u32 %v1798_v44, 16  ;;  %v3283_v53 = vrot.slane %v4718_v47, 5 }
  0xca   : > { %v825_v9 = vld [vmem:[#allocation3 + $0x18] sm:$0xf]  ;;  %v4745_v60 = vsel %vm4711_vm1, %v4002_v10, %v2927_v42  ;;  %v2929_v14 = vrot.slane %v2927_v42, 4  ;;  %v3266_v15 = vsel %vm4711_vm1, %v3264_v46, %v3265_v61  ;;  %v3247_v18 = vld [vmem:[#allocation3 + $0x2c] sm:$0x1]  ;;  %v2934_v19 = vrot.slane %v2905_v56, 5 }
  0xcb   : > { %1146 = vrot.lane.b32.xlu1 %v1125_v57, %s4350_s10  ;;  %v1126_v1 = vld [vmem:[#allocation3 + $0x24] sm:$0xf]  ;;  %v4724_v57 = vsub.s32 %v574_v34, %v4674_v59  ;;  %v4754_v21 = vsel %vm4711_vm1, %v4004_v43, %v2941_v48  ;;  %v1837_v58 = vshll.u32 %v4690_v12, 16  ;;  %v4759_v10 = vsel %vm4711_vm1, %v3278_v55, %v3279_v37  ;;  %v2912_v27 = vld [vmem:[#allocation3 + $0x2c] sm:$0x1] }
  0xcc   : > { %1148 = vrot.lane.b32.xlu0 %v1126_v1, %s4350_s10  ;;  %v4730_v1 = vld [vmem:[#allocation3 + $0x28] sm:$0xf]  ;;  %v3245_v17 = vld [vmem:[#allocation3 + $0x24] sm:$0xe]  ;;  %v3271_v26 = vrot.slane %v3269_v52, 4  ;;  %v2943_v61 = vrot.slane %v2941_v48, 4  ;;  %v3270_v12 = vsel %vm4711_vm1, %v4022_v0, %v3269_v52  ;;  %v4782_v62 = vsel %vm4711_vm1, %v4003_v22, %v2934_v19 }
  0xcd   : > { %v2910_v23 = vld [vmem:[#allocation3 + $0x24] sm:$0xe]  ;;  %v2948_v24 = vrot.slane %v4730_v1, 5  ;;  %v4762_v28 = vrot.slane %v1819_v3, 5  ;;  %v4024_v32 = vrot.slane %v3245_v17, 9  ;;  %v3285_v34 = vrot.slane %v3283_v53, 4 }
  0xce   : > { %v827_v30 = vld [vmem:[#allocation3 + $0x24] sm:$0xf]  ;;  %v1803_v36 = vld [vmem:[#allocation3 + $0x18] sm:$0xf]  ;;  %v3286_v37 = vrot.slane %v3247_v18, 5  ;;  %v4005_v41 = vrot.slane %v2910_v23, 9  ;;  %v3273_v55 = vsel %vm4711_vm1, %v3271_v26, %v3272_v20  ;;  %v4794_v7 = vsel %vm4711_vm1, %v2943_v61, %v2944_v49 }
  0xcf   : > { %1150 = vrot.lane.b32.xlu1 %v1127_v5, %s4350_s10  ;;  %v1801_v5 = vld [vmem:[#allocation3 + $0x10] sm:$0xf]  ;;  %v1839_v42 = vrot.slane %v1837_v58, 5  ;;  %v1804_v43 = vld [vmem:[#allocation3 + $0x1c] sm:$0xf]  ;;  %v2950_v2 = vrot.slane %v2948_v24, 4  ;;  %v3284_v3 = vsel %vm4711_vm1, %v4024_v32, %v3283_v53 }
  0xd0   : > { %837 = vrot.lane.b32.xlu0 %v821_v8, %s4353_s11  ;;  %v4733_v8 = vsub.s32 %v591_v39, %v4674_v59  ;;  %v826_v59 = vld [vmem:[#allocation3 + $0x1c] sm:$0xf]  ;;  %v1843_v54 = vshll.u32 %v1801_v5, 16  ;;  %v1847_v25 = vshrl.u32 %v1801_v5, 16  ;;  %v2936_v39 = vrot.slane %v2934_v19, 4 }
  0xd1   : > { %v2951_v44 = vrot.slane %v2912_v27, 5  ;;  %v828_v47 = vld [vmem:[#allocation3 + $0x28] sm:$0xf]  ;;  %v1802_v48 = vld [vmem:[#allocation3 + $0x14] sm:$0x1]  ;;  %v1861_v52 = vshll.u32 %v1803_v36, 16  ;;  %v4801_v6 = vsel %vm4711_vm1, %v3285_v34, %v3286_v37  ;;  %v1840_v33 = vor.u32 %v1839_v42, %v4721_v50 }
  0xd2   : > { %v4776_v46 = vrot.slane %v1843_v54, 5  ;;  %v1849_v0 = vrot.slane %v1847_v25, 4  ;;  %v1867_v22 = vshll.u32 %v1804_v43, 16  ;;  %v1871_v56 = vshrl.u32 %v1804_v43, 16  ;;  %v1805_v1 = vld [vmem:[#allocation3 + $0x20] sm:$0x1] }
  0xd3   : > { %839 = vrot.lane.b32.xlu1 %v822_v35, %s4353_s11  ;;  %v4773_v35 = vsel %vm4711_vm1, %v2929_v14, %v2930_v11  ;;  %v4807_v20 = vsel %vm4711_vm1, %v2936_v39, %v2937_v31  ;;  %v1806_v49 = vld [vmem:[#allocation3 + $0x24] sm:$0xf]  ;;  %v1853_v31 = vshll.u32 %v1802_v48, 16  ;;  %v1863_v14 = vrot.slane %v1861_v52, 5  ;;  %v2188_v17 = vld [vmem:[#allocation3] sm:$0xf] }
  0xd4   : > { %841 = vrot.lane.b32.xlu0 %v823_v29, %s4353_s11  ;;  %v1825_v29 = vrot.slane %v1823_v4, 4  ;;  %v4812_v4 = vsel %vm4711_vm1, %v4005_v41, %v2948_v24  ;;  %v1850_v16 = vor.u32 %v1849_v0, %v4776_v46  ;;  %v4828_v18 = vrot.slane %v1867_v22, 5  ;;  %v1808_v61 = vld [vmem:[#allocation3 + $0x2c] sm:$0x1]  ;;  %v2192_v41 = vld [vmem:[#allocation3 + $0x10] sm:$0xf] }
  0xd5   : > { %v1873_v19 = vrot.slane %v1871_v56, 4  ;;  %v1882_v58 = vshrl.u32 %v1806_v49, 16  ;;  %v1885_v23 = vshll.u32 %v1806_v49, 16  ;;  %v4835_v54 = vrot.slane %v1840_v33, 4  ;;  %v2191_v39 = vld [vmem:[#allocation3 + $0xc] sm:$0xf] }
  0xd6   : > { %v1826_v11 = vor.u32 %v1825_v29, %v4762_v28  ;;  %v4837_v27 = vrot.slane %v1850_v16, 4  ;;  %v2189_v29 = vld [vmem:[#allocation3 + $0x4] sm:$0xf]  ;;  %v2204_v32 = vshll.u32 %v2188_v17, 16  ;;  %v2194_v0 = vld [vmem:[#allocation3 + $0x18] sm:$0xf] }
  0xd7   : > { %843 = vrot.lane.b32.xlu1 %v824_v51, %s4353_s11  ;;  %v1858_v51 = vshrl.u32 %v1803_v36, 16  ;;  %v1874_v42 = vor.u32 %v1873_v19, %v4828_v18  ;;  %v1884_v43 = vrot.slane %v1882_v58, 4  ;;  %v2210_v48 = vshll.u32 %v2189_v29, 16  ;;  %v2195_v52 = vld [vmem:[#allocation3 + $0x1c] sm:$0xf] }
  0xd8   : > { %845 = vrot.lane.b32.xlu0 %v825_v9, %s4353_s11  ;;  %v1807_v9 = vld [vmem:[#allocation3 + $0x28] sm:$0xf]  ;;  %v4825_v50 = vrot.slane %v1826_v11, 4  ;;  %v2206_v56 = vrot.slane %v2204_v32, 5  ;;  %v2238_v33 = vshrl.u32 %v2192_v41, 16  ;;  %v2228_v49 = vshll.u32 %v2191_v39, 16 }
  0xd9   : > { %v1860_v53 = vrot.slane %v1858_v51, 4  ;;  %v1891_v25 = vshll.u32 %v1807_v9, 16  ;;  %v1895_v26 = vshrl.u32 %v1807_v9, 16  ;;  %v2214_v51 = vshrl.u32 %v2189_v29, 16  ;;  %v1422_v34 = vld [vmem:[#allocation3 + $0xc] sm:$0xf] }
  0xda   : > { %v2249_v16 = vshrl.u32 %v2194_v0, 16  ;;  %v4865_v19 = vrot.slane %v2210_v48, 5  ;;  %v2240_v29 = vrot.slane %v2238_v33, 4  ;;  %v2230_v32 = vrot.slane %v2228_v49, 5  ;;  %v2198_v49 = vld [vmem:[#allocation3 + $0x28] sm:$0xf] }
  0xdb   : > { %847 = vrot.lane.b32.xlu1 %v826_v59, %s4353_s11  ;;  %v1877_v59 = vshll.u32 %v1805_v1, 16  ;;  %v1864_v36 = vor.u32 %v1863_v14, %v1860_v53  ;;  %v1897_v11 = vrot.slane %v1895_v26, 4  ;;  %v2234_v1 = vshll.u32 %v2192_v41, 16  ;;  %v1423_v24 = vld [vmem:[#allocation3 + $0x10] sm:$0xf] }
  0xdc   : > { %849 = vrot.lane.b32.xlu0 %v827_v30, %s4353_s11  ;;  %v2201_v30 = vshrl.u32 %v2188_v17, 16  ;;  %v2258_v53 = vshll.u32 %v2195_v52, 16  ;;  %v2262_v14 = vshrl.u32 %v2195_v52, 16  ;;  %v2216_v58 = vrot.slane %v2214_v51, 4  ;;  %v2584_v52 = vld [vmem:[#allocation3 + $0x14] sm:$0x1] }
  0xdd   : > { %v4849_v37 = vrot.slane %v1877_v59, 5  ;;  %v4859_v9 = vrot.slane %v1864_v36, 4  ;;  %v2193_v36 = vld [vmem:[#allocation3 + $0x14] sm:$0x1]  ;;  %v1472_v40 = vshrl.u32 %v1423_v24, 16  ;;  %vm3636_vm12 = vcmask 1043456  }
  0xde   : > { %v2203_v22 = vrot.slane %v2201_v30, 4  ;;  %v2217_v48 = vor.u32 %v2216_v58, %v4865_v19  ;;  %v2244_v33 = vshll.u32 %v2193_v36, 16  ;;  %v2286_v36 = vshrl.u32 %v2198_v49, 16  ;;  %v4977_v58 = vld [vmem:[#allocation3 + $0x4] sm:$0xf] }
  0xdf   : > { %851 = vrot.lane.b32.xlu1 %v828_v47, %s4353_s11  ;;  %v4855_v47 = vrot.slane %v1891_v25, 5  ;;  %vm3632_vm13 = vcmask 588800  }
  0xe0   : > { %3288 = vrot.lane.b32.xlu0 %v3263_v63, %s4350_s10  ;;  %v4816_v63 = vsel %vm4711_vm1, %v2950_v2, %v2951_v44  ;;  %v1887_v2 = vrot.slane %v1885_v23, 5  ;;  %v1901_v44 = vshll.u32 %v1808_v61, 16  ;;  %v2197_v23 = vld [vmem:[#allocation3 + $0x24] sm:$0xf]  ;;  %v2207_v26 = vor.u32 %v2206_v56, %v2203_v22  ;;  %v2190_v61 = vld [vmem:[#allocation3 + $0x8] sm:$0x1] }
  0xe1   : > { %v1898_v17 = vor.u32 %v1897_v11, %v4855_v47  ;;  %v2220_v51 = vshll.u32 %v2190_v61, 16  ;;  %v2580_v61 = vld [vmem:[#allocation3 + $0x4] sm:$0xf] }
  0xe2   : > { %v1888_v59 = vor.u32 %v1887_v2, %v1884_v43  ;;  %v4867_v25 = vrot.slane %v1901_v44, 5  ;;  %v2264_v43 = vrot.slane %v2262_v14, 4  ;;  %v2273_v2 = vshrl.u32 %v2197_v23, 16 }
  0xe3   : > { %3290 = vrot.lane.b32.xlu1 %v3266_v15, %s4350_s10  ;;  %v4839_v15 = vrot.slane %v1853_v31, 5  ;;  %v2252_v31 = vshll.u32 %v2194_v0, 16  ;;  %v2276_v44 = vshll.u32 %v2197_v23, 16  ;;  %v4879_v11 = vrot.slane %v1898_v17, 4  ;;  %v4900_v17 = vld [vmem:[#allocation3 + $0x10] sm:$0xf] }
  0xe4   : > { %3292 = vrot.lane.b32.xlu0 %v3270_v12, %s4350_s10  ;;  %v4877_v0 = vrot.slane %v1888_v59, 4  ;;  %v4895_v56 = vrot.slane %v2207_v26, 4  ;;  %v2199_v59 = vld [vmem:[#allocation3 + $0x2c] sm:$0x1]  ;;  %v4912_v23 = vrot.slane %v2217_v48, 4  ;;  %v4914_v26 = vrot.slane %v2220_v51, 5 }
  0xe5   : > { %v2254_v41 = vrot.slane %v2252_v31, 5  ;;  %v2278_v14 = vrot.slane %v2276_v44, 5  ;;  %v2588_v44 = vld [vmem:[#allocation3 + $0x24] sm:$0xe]  ;;  %v2615_v48 = vrot.slane %v4900_v17, 5 }
  0xe7   : > { %3294 = vrot.lane.b32.xlu1 %v3273_v55, %s4350_s10  ;;  %v2225_v55 = vshrl.u32 %v2191_v39, 16  ;;  %v2251_v39 = vrot.slane %v2249_v16, 4  ;;  %v2617_v12 = vrot.slane %v2615_v48, 4 }
  0xe8   : > { %3296 = vrot.lane.b32.xlu0 %v4738_v13, %s4350_s10  ;;  %v4861_v13 = vrot.slane %v1874_v42, 4  ;;  %v2196_v42 = vld [vmem:[#allocation3 + $0x20] sm:$0x1] }
  0xe9   : > { %v2227_v30 = vrot.slane %v2225_v55, 4  ;;  %v2268_v55 = vshll.u32 %v2196_v42, 16  ;;  %v2255_v16 = vor.u32 %v2254_v41, %v2251_v39  ;;  %v2579_v39 = vld [vmem:[#allocation3] sm:$0xe]  ;;  %v2589_v41 = vld [vmem:[#allocation3 + $0x28] sm:$0xf] }
  0xea   : > { %v2629_v17 = vrot.slane %v2589_v41, 5  ;;  %v3986_v41 = vrot.slane %v2588_v44, 9 }
  0xeb   : > { %3298 = vrot.lane.b32.xlu1 %v4759_v10, %s4350_s10  ;;  %v4869_v10 = vrot.slane %v2234_v1, 5  ;;  %v2231_v1 = vor.u32 %v2230_v32, %v2227_v30  ;;  %v2282_v32 = vshll.u32 %v2198_v49, 16  ;;  %v4931_v51 = vrot.slane %v2255_v16, 4 }
  0xec   : > { %3300 = vrot.lane.b32.xlu0 %v3284_v3, %s4350_s10  ;;  %v4873_v3 = vrot.slane %v2258_v53, 5  ;;  %v2275_v53 = vrot.slane %v2273_v2, 4  ;;  %v4926_v2 = vrot.slane %v2268_v55, 5  ;;  %v2292_v49 = vshll.u32 %v2199_v59, 16  ;;  %v2585_v59 = vld [vmem:[#allocation3 + $0x18] sm:$0xe] }
  0xed   : > { %v2241_v22 = vor.u32 %v2240_v29, %v4869_v10  ;;  %v2582_v29 = vld [vmem:[#allocation3 + $0xc] sm:$0xe]  ;;  %v4922_v42 = vrot.slane %v2231_v1, 4 }
  0xee   : > { %v2265_v31 = vor.u32 %v2264_v43, %v4873_v3  ;;  %v4924_v43 = vrot.slane %v2244_v33, 5  ;;  %v2608_v33 = vrot.slane %v2580_v61, 5  ;;  %v3984_v55 = vrot.slane %v2582_v29, 9 }
  0xef   : > { %3302 = vrot.lane.b32.xlu1 %v4801_v6, %s4350_s10  ;;  %v4920_v30 = vrot.slane %v2241_v22, 4  ;;  %v3983_v61 = vrot.slane %v2579_v39, 9  ;;  %v4969_v16 = vrot.slane %v2292_v49, 5 }
  0xf0   : > { %2953 = vrot.lane.b32.xlu0 %v4745_v60, %s4353_s11  ;;  %v4933_v22 = vrot.slane %v2265_v31, 4  ;;  %v4949_v31 = vrot.slane %v2282_v32, 5  ;;  %v4955_v29 = vsel %vm4711_vm1, %v3984_v55, %v2615_v48  ;;  %v2587_v55 = vld [vmem:[#allocation3 + $0x20] sm:$0x1]  ;;  %v2581_v60 = vld [vmem:[#allocation3 + $0x8] sm:$0x1] }
  0xf1   : > { %6337 = vst [vmem:[#allocation11_spill] sm:$0xff] %v4969_v16  ;;  %v1459_v16 = vshrl.u32 %v1422_v34, 16 }
  0xf3   : > { %2955 = vrot.lane.b32.xlu1 %v4773_v35, %s4353_s11  ;;  %v1419_v35 = vld [vmem:[#allocation3] sm:$0xf] }
  0xf4   : > { %2957 = vrot.lane.b32.xlu0 %v4782_v62, %s4353_s11  ;;  %v2279_v62 = vor.u32 %v2278_v14, %v2275_v53  ;;  %v2586_v53 = vld [vmem:[#allocation3 + $0x1c] sm:$0xf]  ;;  %v2590_v14 = vld [vmem:[#allocation3 + $0x2c] sm:$0x1]  ;;  %v1435_v1 = vshrl.u32 %v1419_v35, 16  ;;  %v1438_v6 = vshll.u32 %v1419_v35, 16 }
  0xf5   : > { %v2622_v44 = vrot.slane %v2586_v53, 5  ;;  %v2632_v32 = vrot.slane %v2590_v14, 5  ;;  %v2625_v53 = vrot.slane %v2587_v55, 5  ;;  %v1444_v35 = vshll.u32 %v4977_v58, 16 }
  0xf6   : > { %v4967_v39 = vrot.slane %v2279_v62, 4  ;;  %v3985_v62 = vrot.slane %v2585_v59, 9  ;;  %v1437_v14 = vrot.slane %v1435_v1, 4  ;;  %v2611_v1 = vrot.slane %v2581_v60, 5 }
  0xf7   : > { %2959 = vrot.lane.b32.xlu1 %v4807_v20, %s4353_s11  ;;  %v2631_v20 = vrot.slane %v2629_v17, 4  ;;  %v1440_v48 = vrot.slane %v1438_v6, 5  ;;  %v2618_v59 = vrot.slane %v2584_v52, 5  ;;  %v6339_v6 = vsel %vm4820_vm4, %v4825_v50, %v4706_v38  ;;  %v1429_v50 = vld [vmem:[#allocation3 + $0x28] sm:$0xf] }
  0xf8   : > { %2961 = vrot.lane.b32.xlu0 %v4754_v21, %s4353_s11  ;;  %v4951_v21 = vrot.slane %v2286_v36, 4  ;;  %6336 = vst [vmem:[#allocation10_spill] sm:$0xff] %v4967_v39  ;;  %v2610_v36 = vrot.slane %v2608_v33, 4  ;;  %v6340_v38 = vsel %vm4820_vm4, %v4835_v54, %v4776_v46  ;;  %v6341_v46 = vsel %vm4820_vm4, %v4837_v27, %v4839_v15 }
  0xf9   : > { %v1441_v60 = vor.u32 %v1440_v48, %v1437_v14 }
  0xfa   : > { %v5025_v52 = vsel %vm4711_vm1, %v2610_v36, %v2611_v1  ;;  %v1448_v36 = vshrl.u32 %v4977_v58, 16 }
  0xfb   : > { %2963 = vrot.lane.b32.xlu1 %v4794_v7, %s4353_s11  ;;  %v4975_v7 = vsel %vm4711_vm1, %v3983_v61, %v2608_v33  ;;  %v2624_v61 = vrot.slane %v2622_v44, 4  ;;  %v1421_v33 = vld [vmem:[#allocation3 + $0x8] sm:$0x1] }
  0xfc   : > { %2965 = vrot.lane.b32.xlu0 %v4812_v4, %s4353_s11  ;;  %v2636_v49 = vpack.i.b16 %v4955_v29, %v4975_v7  ;;  %v4985_v4 = vsel %vm4711_vm1, %v3986_v41, %v2629_v17  ;;  %v6338_v17 = vsel %vm4820_vm4, %v4715_v45, %v4762_v28  ;;  %v5006_v41 = vsel %vm4711_vm1, %v2631_v20, %v2632_v32  ;;  %v1425_v28 = vld [vmem:[#allocation3 + $0x18] sm:$0xf] }
  0xfd   : > { %v5015_v45 = vsel %vm4711_vm1, %v2624_v61, %v2625_v53  ;;  %v5029_v20 = vsel %vm4711_vm1, %v2617_v12, %v2618_v59  ;;  %v1461_v61 = vrot.slane %v1459_v16, 4  ;;  %v1442_v12 = vrot.slane %v1441_v60, 4  ;;  %v1424_v60 = vld [vmem:[#allocation3 + $0x14] sm:$0x1] }
  0xfe   : > { %v5011_v55 = vrot.slane %v2636_v49, %v4724_v57  ;;  %v1446_v49 = vrot.slane %v1444_v35, 5  ;;  %v1483_v14 = vshrl.u32 %v1425_v28, 16  ;;  %v1486_v59 = vshll.u32 %v1425_v28, 16 }
  0xff   : > { %2967 = vrot.lane.b32.xlu1 %v4816_v63, %s4353_s11  ;;  %v5002_v63 = vsel %vm4711_vm1, %v3985_v62, %v2622_v44  ;;  %v1426_v44 = vld [vmem:[#allocation3 + $0x1c] sm:$0xf]  ;;  %v1462_v62 = vshll.u32 %v1422_v34, 16  ;;  %v1428_v34 = vld [vmem:[#allocation3 + $0x24] sm:$0xf]  ;;  %v6342_v28 = vsel %vm4820_vm4, %v4859_v9, %v4828_v18  ;;  %v1478_v39 = vshll.u32 %v1424_v60, 16 }
 0x100   : > { %1905 = vrot.lane.b32.xlu0 %v6338_v17, %s4353_s11  ;;  %v1468_v17 = vshll.u32 %v1423_v24, 16  ;;  %v1492_v1 = vshll.u32 %v1426_v44, 16  ;;  %v1507_v35 = vshrl.u32 %v1428_v34, 16  ;;  %v1510_v32 = vshll.u32 %v1428_v34, 16 }
 0x101   : > { %v1464_v53 = vrot.slane %v1462_v62, 5  ;;  %v1485_v54 = vrot.slane %v1483_v14, 4  ;;  %v1488_v58 = vrot.slane %v1486_v59, 5  ;;  %v1496_v16 = vshrl.u32 %v1426_v44, 16  ;;  %v1427_v59 = vld [vmem:[#allocation3 + $0x20] sm:$0x1] }
 0x102   : > { %v1516_v24 = vshll.u32 %v1429_v50, 16  ;;  %v5054_v62 = vsel %vm4820_vm4, %v1442_v12, %v1446_v49  ;;  %v1509_v34 = vrot.slane %v1507_v35, 4  ;;  %v1512_v27 = vrot.slane %v1510_v32, 5 }
 0x103   : > { %1907 = vrot.lane.b32.xlu1 %v6339_v6, %s4353_s11  ;;  %v1465_v48 = vor.u32 %v1464_v53, %v1461_v61  ;;  %v1470_v6 = vrot.slane %v1468_v17, 5  ;;  %v1494_v17 = vrot.slane %v1492_v1, 5  ;;  %v1450_v61 = vrot.slane %v1448_v36, 4 }
 0x104   : > { %1909 = vrot.lane.b32.xlu0 %v6340_v38, %s4353_s11  ;;  %v1489_v38 = vor.u32 %v1488_v58, %v1485_v54  ;;  %v1454_v44 = vshll.u32 %v1421_v33, 16  ;;  %v1513_v53 = vor.u32 %v1512_v27, %v1509_v34  ;;  %v1520_v14 = vshrl.u32 %v1429_v50, 16 }
 0x105   : > { %v1466_v15 = vrot.slane %v1465_v48, 4  ;;  %v6343_v18 = vsel %vm4820_vm4, %v4861_v13, %v4849_v37  ;;  %v1518_v12 = vrot.slane %v1516_v24, 5  ;;  %v1451_v36 = vor.u32 %v1450_v61, %v1446_v49 }
 0x106   : > { %v1490_v32 = vrot.slane %v1489_v38, 4  ;;  %v6344_v33 = vsel %vm4820_vm4, %v4877_v0, %v4855_v47  ;;  %v1514_v50 = vrot.slane %v1513_v53, 4  ;;  %v1456_v1 = vrot.slane %v1454_v44, 5 }
 0x107   : > { %1911 = vrot.lane.b32.xlu1 %v6341_v46, %s4353_s11  ;;  %v1474_v46 = vrot.slane %v1472_v40, 4  ;;  %v5064_v9 = vsel %vm4820_vm4, %v1466_v15, %v1470_v6  ;;  %v1430_v40 = vld [vmem:[#allocation3 + $0x2c] sm:$0x1]  ;;  %v1498_v37 = vrot.slane %v1496_v16, 4  ;;  %v1452_v35 = vrot.slane %v1451_v36, 4 }
 0x108   : > { %1913 = vrot.lane.b32.xlu0 %v6342_v28, %s4353_s11  ;;  %v1495_v13 = vsel %vm4820_vm4, %v1490_v32, %v1494_v17  ;;  %v1480_v54 = vrot.slane %v1478_v39, 5  ;;  %v1502_v58 = vshll.u32 %v1427_v59, 16  ;;  %v1519_v49 = vsel %vm4820_vm4, %v1514_v50, %v1518_v12 }
 0x109   : > { %v1475_v48 = vor.u32 %v1474_v46, %v1470_v6  ;;  %v1499_v60 = vor.u32 %v1498_v37, %v1494_v17  ;;  %v1522_v28 = vrot.slane %v1520_v14, 4  ;;  %v6345_v47 = vsel %vm4820_vm4, %v4879_v11, %v4867_v25 }
 0x10a   : > { %v1532_v0 = vpack.i.b16 %v5064_v9, %v5054_v62  ;;  %v1538_v6 = vpack.i.b16 %v1519_v49, %v1495_v13  ;;  %v1504_v16 = vrot.slane %v1502_v58, 5  ;;  %v1526_v39 = vshll.u32 %v1430_v40, 16 }
 0x10b   : > { %1915 = vrot.lane.b32.xlu1 %v6343_v18, %s4353_s11  ;;  %v1476_v24 = vrot.slane %v1475_v48, 4  ;;  %v6346_v17 = vsel %vm4820_vm4, %v4895_v56, %v4865_v19  ;;  %v1457_v34 = vsel %vm4820_vm4, %v1452_v35, %v1456_v1  ;;  %v1500_v11 = vrot.slane %v1499_v60, 4 }
 0x10c   : > { %1917 = vrot.lane.b32.xlu0 %v6344_v33, %s4353_s11  ;;  %v1523_v27 = vor.u32 %v1522_v28, %v1518_v12  ;;  %v6347_v15 = vpack.i.b16 %v4985_v4, %v5002_v63  ;;  %v2648_v61 = vpack.i.b16 %v5029_v20, %v5025_v52  ;;  %v1528_v44 = vrot.slane %v1526_v39, 5 }
 0x10d   : > { %v1481_v25 = vsel %vm4820_vm4, %v1476_v24, %v1480_v54  ;;  %v2644_v19 = vshrl.u32 %v4985_v4, 16  ;;  %v5102_v56 = vrot.slane %v1538_v6, %v4724_v57  ;;  %v1505_v14 = vsel %vm4820_vm4, %v1500_v11, %v1504_v16 }
 0x10e   : > { %v2673_v38 = vrot.slane %v6347_v15, %v4724_v57  ;;  %v1544_v53 = vpack.i.b16 %v1481_v25, %v1457_v34  ;;  %v1524_v59 = vrot.slane %v1523_v27, 4  ;;  %v6348_v46 = vsel %vm4820_vm4, %v4912_v23, %v4914_v26 }
 0x10f   : > { %1919 = vrot.lane.b32.xlu1 %v6345_v47, %s4353_s11  ;;  %v6349_v18 = vpack.i.b16 %v5006_v41, %v5015_v45  ;;  %v5117_v4 = vrot.slane %v1532_v0, %v4724_v57  ;;  %v1534_v12 = vshrl.u32 %v5064_v9, 16  ;;  %v1540_v36 = vshrl.u32 %v1519_v49, 16 }
 0x110   : > { %2296 = vrot.lane.b32.xlu0 %v6346_v17, %s4350_s10  ;;  %v6350_v33 = vsel %vm4820_vm4, %v4922_v42, %v4869_v10  ;;  %v1529_v23 = vsel %vm4820_vm4, %v1524_v59, %v1528_v44  ;;  %v5129_v26 = vrot.slane %v1544_v53, %v4724_v57  ;;  %v1539_v50 = vshrl.u32 %v1495_v13, 16 }
 0x111   : > { %v2741_v32 = vrot.slane %v6349_v18, %v4724_v57  ;;  %v1546_v40 = vshrl.u32 %v1481_v25, 16  ;;  %v1550_v1 = vpack.i.b16 %v1529_v23, %v1505_v14  ;;  %v1545_v48 = vshrl.u32 %v1457_v34, 16 }
 0x112   : > { %6351 = vst [vmem:[#allocation12_spill] sm:$0xff] %v5129_v26  ;;  %v1551_v37 = vshrl.u32 %v1505_v14, 16  ;;  %v1552_v9 = vshrl.u32 %v1529_v23, 16  ;;  %v2674_v35 = vcombine.low %v5011_v55, %v2673_v38  ;;  %v2733_v54 = vrot.slane %v2648_v61, %v4724_v57 }
 0x113   : > { %2298 = vrot.lane.b32.xlu1 %v6348_v46, %s4350_s10  ;;  %v1533_v58 = vshrl.u32 %v5054_v62, 16  ;;  %v6352_v42 = vsel %vm4820_vm4, %v4920_v30, %v4924_v43  ;;  %v5143_v13 = vrot.slane %v1550_v1, %v4724_v57  ;;  %v1541_v49 = vpack.i.b16 %v1540_v36, %v1539_v50 }
 0x114   : > { %2300 = vrot.lane.b32.xlu0 %v6350_v33, %s4350_s10  ;;  %v1547_v24 = vpack.i.b16 %v1546_v40, %v1545_v48  ;;  %v1553_v60 = vpack.i.b16 %v1552_v9, %v1551_v37  ;;  %v6354_v62 = vsel %vm4820_vm4, %v4931_v51, %v4873_v3  ;;  %v6355_v28 = vor.u32 %v4951_v21, %v4949_v31 }
 0x115   : > { %6353 = vst [vmem:[#allocation13_spill] sm:$0xff] %v5143_v13  ;;  %v2637_v30 = vshrl.u32 %v4975_v7, 16  ;;  %v2638_v43 = vshrl.u32 %v4955_v29, 16  ;;  %v2643_v0 = vshrl.u32 %v5002_v63, 16  ;;  %v2742_v6 = vcombine.low %v2733_v54, %v2741_v32 }
 0x116   : > { %v2290_v47 = vrot.slane %v6355_v28, 4  ;;  %v2656_v16 = vshrl.u32 %v5006_v41, 16  ;;  %v1535_v39 = vpack.i.b16 %v1534_v12, %v1533_v58  ;;  %v5161_v3 = vrot.slane %v2674_v35, %v4733_v8 }
 0x117   : > { %2302 = vrot.lane.b32.xlu1 %v6352_v42, %s4350_s10  ;;  %v2675_v51 = vcombine.high %v5011_v55, %v2673_v38  ;;  %v2645_v21 = vpack.i.b16 %v2644_v19, %v2643_v0  ;;  %v2650_v34 = vshrl.u32 %v5029_v20, 16  ;;  %v6356_v29 = vsel %vm4820_vm4, %v4933_v22, %v4926_v2  ;;  %v6360_v20 = vld [vmem:[#allocation10_spill] sm:$0xff]  ;;  %v6363_v38 = vld [vmem:[#allocation11_spill] sm:$0xff] }
 0x118   : > { %2304 = vrot.lane.b32.xlu0 %v6354_v62, %s4350_s10  ;;  %v2655_v7 = vshrl.u32 %v5015_v45, 16  ;;  %v5173_v63 = vrot.slane %v1541_v49, %v4724_v57  ;;  %v5176_v41 = vrot.slane %v1547_v24, %v4724_v57  ;;  %v5179_v55 = vrot.slane %v1553_v60, %v4724_v57 }
 0x119   : > { %v6361_v25 = vsel %vm4820_vm4, %v6360_v20, %v4949_v31  ;;  %v2639_v2 = vpack.i.b16 %v2638_v43, %v2637_v30  ;;  %v2649_v22 = vshrl.u32 %v5025_v52, 16  ;;  %v5189_v45 = vrot.slane %v2742_v6, %v4733_v8 }
 0x11a   : > { %6357 = vst [vmem:[#allocation14_spill] sm:$0xff] %v5173_v63  ;;  %6358 = vst [vmem:[#allocation15_spill] sm:$0xff] %v5176_v41  ;;  %v2743_v11 = vcombine.high %v2733_v54, %v2741_v32  ;;  %v2657_v27 = vpack.i.b16 %v2656_v16, %v2655_v7  ;;  %v5192_v15 = vrot.slane %v1535_v39, %v4724_v57 }
 0x11b   : > { %2306 = vrot.lane.b32.xlu1 %v6356_v29, %s4350_s10  ;;  %6359 = vst [vmem:[#allocation16_spill] sm:$0xff] %v5179_v55  ;;  %v2295_v61 = vsel %vm4820_vm4, %v2290_v47, %v6363_v38  ;;  %v4115_v44 = vcombine.high %v5161_v3, %v5161_v3  ;;  %v2689_v31 = vrot.slane %v2675_v51, %v4733_v8 }
 0x11c   : > { %2308 = vrot.lane.b32.xlu0 %v6361_v25, %s4350_s10  ;;  %6362 = vst [vmem:[#allocation10_spill] sm:$0xff] %v5192_v15  ;;  %v2707_v53 = vrot.slane %v2645_v21, %v4724_v57  ;;  %v2651_v52 = vpack.i.b16 %v2650_v34, %v2649_v22  ;;  %v2699_v5 = vrot.slane %v2639_v2, %v4724_v57 }
 0x11d   : > { %v4119_v59 = vcombine.high %v5189_v45, %v5189_v45  ;;  %v2757_v46 = vrot.slane %v2743_v11, %v4733_v8  ;;  %v2775_v18 = vrot.slane %v2657_v27, %v4724_v57  ;;  %v3990_v32 = vcombine.low %v2689_v31, %v2689_v31 }
 0x11e   : > { %v2708_v12 = vcombine.low %v2699_v5, %v2707_v53  ;;  %v2767_v36 = vrot.slane %v2651_v52, %v4724_v57  ;;  %v4117_v50 = vcombine.high %v2689_v31, %v2689_v31  ;;  %v2709_v9 = vcombine.high %v2699_v5, %v2707_v53 }
 0x11f   : > { %2310 = vrot.lane.b32.xlu1 %v2295_v61, %s4350_s10  ;;  %v3997_v33 = vcombine.low %v2757_v46, %v2757_v46  ;;  %v4121_v1 = vcombine.high %v2757_v46, %v2757_v46  ;;  %v1570_v28 = vcombine.low %v5117_v4, %v5102_v56  ;;  %v1638_v0 = vcombine.low %v5129_v26, %v5143_v13 }
 0x120   : > { %2802 = vrot.lane.b32.xlu0 %v4115_v44, %s4354_s12  ;;  %v2776_v23 = vcombine.low %v2767_v36, %v2775_v18  ;;  %v2716_v40 = vrot.slane %v2708_v12, %v4733_v8  ;;  %v2777_v54 = vcombine.high %v2767_v36, %v2775_v18  ;;  %v2723_v49 = vrot.slane %v2709_v9, %v4733_v8 }
 0x121   : > { %v5232_v16 = vrot.slane %v1570_v28, %v4733_v8  ;;  %v1604_v39 = vcombine.low %v5192_v15, %v5173_v63  ;;  %v5239_v34 = vrot.slane %v1638_v0, %v4733_v8  ;;  %v1672_v29 = vcombine.low %v5176_v41, %v5179_v55 }
 0x122   : > { %v2784_v48 = vrot.slane %v2776_v23, %v4733_v8  ;;  %v3987_v37 = vcombine.low %v2716_v40, %v2716_v40  ;;  %v4116_v42 = vcombine.high %v2716_v40, %v2716_v40  ;;  %v2791_v60 = vrot.slane %v2777_v54, %v4733_v8 }
 0x123   : > { %2837 = vrot.lane.b32.xlu1 %v4119_v59, %s4354_s12  ;;  %v3991_v62 = vcombine.low %v2723_v49, %v2723_v49  ;;  %v4118_v6 = vcombine.high %v2723_v49, %v2723_v49  ;;  %6364 = vst [vmem:[#allocation11_spill] sm:$0xff] %v5232_v16  ;;  %6365 = vst [vmem:[#allocation17_spill] sm:$0xff] %v5239_v34  ;;  %v4091_v20 = vcombine.high %v5232_v16, %v5232_v16 }
 0x124   : > { %2812 = vrot.lane.b32.xlu0 %v3990_v32, %s4355_s13  ;;  %v3994_v35 = vcombine.low %v2784_v48, %v2784_v48  ;;  %v4120_v24 = vcombine.high %v2784_v48, %v2784_v48  ;;  %v3998_v43 = vcombine.low %v2791_v60, %v2791_v60  ;;  %v4122_v21 = vcombine.high %v2791_v60, %v2791_v60 }
 0x125   : > { %v1612_v25 = vrot.slane %v1604_v39, %v4733_v8  ;;  %v4095_v38 = vcombine.high %v5239_v34, %v5239_v34  ;;  %v1680_v61 = vrot.slane %v1672_v29, %v4733_v8 }
 0x127   : > { %2847 = vrot.lane.b32.xlu1 %v3997_v33, %s4355_s13  ;;  %v3938_v53 = vcombine.low %v1612_v25, %v1612_v25  ;;  %v4092_v12 = vcombine.high %v1612_v25, %v1612_v25  ;;  %v3945_v40 = vcombine.low %v1680_v61, %v1680_v61 }
 0x128   : > { %2822 = vrot.lane.b32.xlu0 %v4117_v50, %s4356_s14 }
 0x12a   : > { %v1137_v58 = vpop.permute.xlu0 %1136 }
 0x12b   : > { %2857 = vrot.lane.b32.xlu1 %v4121_v1, %s4356_s14  ;;  %v1155_v22 = vshrl.u32 %v1137_v58, 16 }
 0x12c   : > { %2797 = vrot.lane.b32.xlu0 %v3987_v37, %s4357_s21 }
 0x12e   : > { %v1141_v47 = vpop.permute.xlu0 %1140 }
 0x12f   : > { %2832 = vrot.lane.b32.xlu1 %v3994_v35, %s4357_s21  ;;  %v1156_v2 = vshrl.u32 %v1141_v47, 16  ;;  %v1154_v11 = vpack.i.b16 %v1141_v47, %v1137_v58 }
 0x130   : > { %2807 = vrot.lane.b32.xlu0 %v4116_v42, %s4358_s22 }
 0x131   : > { %v1157_v52 = vpack.i.b16 %v1156_v2, %v1155_v22  ;;  %v5254_v36 = vrot.slane %v1154_v11, %v4724_v57 }
 0x132   : > { %v1145_v7 = vpop.permute.xlu0 %1144 }
 0x133   : > { %2842 = vrot.lane.b32.xlu1 %v4120_v24, %s4358_s22  ;;  %v1161_v5 = vshrl.u32 %v1145_v7, 16  ;;  %v5262_v54 = vrot.slane %v1157_v52, %v4724_v57 }
 0x134   : > { %2817 = vrot.lane.b32.xlu0 %v3991_v62, %s4359_s24 }
 0x135   : > { %v1139_v30 = vpop.permute.xlu1 %1138  ;;  %6366 = vst [vmem:[#allocation18_spill] sm:$0xff] %v5262_v54 }
 0x136   : > { %v1167_v18 = vshrl.u32 %v1139_v30, 16 }
 0x137   : > { %2852 = vrot.lane.b32.xlu1 %v3998_v43, %s4359_s24 }
 0x138   : > { %2827 = vrot.lane.b32.xlu0 %v4118_v6, %s4360_s26 }
 0x139   : > { %v1143_v51 = vpop.permute.xlu1 %1142 }
 0x13a   : > { %v1168_v44 = vshrl.u32 %v1143_v51, 16  ;;  %v1166_v32 = vpack.i.b16 %v1143_v51, %v1139_v30  ;;  %v4096_v30 = vcombine.high %v1680_v61, %v1680_v61 }
 0x13b   : > { %2862 = vrot.lane.b32.xlu1 %v4122_v21, %s4360_s26 }
 0x13c   : > { %1698 = vrot.lane.b32.xlu0 %v4091_v20, %s4354_s12  ;;  %v1169_v1 = vpack.i.b16 %v1168_v44, %v1167_v18  ;;  %v5273_v24 = vrot.slane %v1166_v32, %v4724_v57 }
 0x13d   : > { %v1147_v27 = vpop.permute.xlu1 %1146 }
 0x13e   : > { %v1149_v31 = vpop.permute.xlu0 %1148  ;;  %v1173_v48 = vshrl.u32 %v1147_v27, 16  ;;  %v5289_v6 = vrot.slane %v1169_v1, %v4724_v57 }
 0x13f   : > { %v1160_v59 = vpack.i.b16 %v1149_v31, %v1145_v7  ;;  %v1162_v46 = vshrl.u32 %v1149_v31, 16  ;;  %1733 = vrot.lane.b32.xlu1 %v4095_v38, %s4354_s12 }
 0x140   : > { %1693 = vrot.lane.b32.xlu0 %v3938_v53, %s4357_s21  ;;  %6369 = vst [vmem:[#allocation21_spill] sm:$0xff] %v5289_v6 }
 0x141   : > { %v1163_v33 = vpack.i.b16 %v1162_v46, %v1161_v5  ;;  %v5257_v23 = vrot.slane %v1160_v59, %v4724_v57  ;;  %v1151_v50 = vpop.permute.xlu1 %1150 }
 0x142   : > { %v1172_v37 = vpack.i.b16 %v1151_v50, %v1147_v27  ;;  %v1174_v9 = vshrl.u32 %v1151_v50, 16  ;;  %v5259_v35 = vpop.permute.xlu0 %837 }
 0x143   : > { %v1192_v58 = vcombine.low %v5254_v36, %v5257_v23  ;;  %v5269_v49 = vrot.slane %v1163_v33, %v4724_v57  ;;  %1728 = vrot.lane.b32.xlu1 %v3945_v40, %s4357_s21 }
 0x144   : > { %v1175_v60 = vpack.i.b16 %v1174_v9, %v1173_v48  ;;  %v5276_v62 = vrot.slane %v1172_v37, %v4724_v57  ;;  %1703 = vrot.lane.b32.xlu0 %v4092_v12, %s4358_s22 }
 0x145   : > { %6367 = vst [vmem:[#allocation19_spill] sm:$0xff] %v5269_v49  ;;  %v5281_v47 = vpop.permute.xlu1 %839  ;;  %v5284_v43 = vrot.slane %v1192_v58, %v4733_v8  ;;  %v1226_v0 = vcombine.low %v5262_v54, %v5269_v49 }
 0x146   : > { %v1260_v39 = vcombine.low %v5273_v24, %v5276_v62  ;;  %v5296_v21 = vrot.slane %v1175_v60, %v4724_v57  ;;  %v5298_v29 = vpop.permute.xlu0 %841 }
 0x147   : > { %6368 = vst [vmem:[#allocation20_spill] sm:$0xff] %v5284_v43  ;;  %1738 = vrot.lane.b32.xlu1 %v4096_v30, %s4358_s22  ;;  %v4083_v7 = vcombine.high %v5284_v43, %v5284_v43  ;;  %v1234_v20 = vrot.slane %v1226_v0, %v4733_v8 }
 0x148   : > { %6370 = vst [vmem:[#allocation22_spill] sm:$0xff] %v5296_v21  ;;  %v5307_v2 = vrot.slane %v1260_v39, %v4733_v8  ;;  %v1294_v22 = vcombine.low %v5289_v6, %v5296_v21 }
 0x149   : > { %v5311_v11 = vpop.permute.xlu1 %843  ;;  %1320 = vrot.lane.b32.xlu0 %v4083_v7, %s4354_s12  ;;  %v3923_v44 = vcombine.low %v1234_v20, %v1234_v20  ;;  %v4084_v5 = vcombine.high %v1234_v20, %v1234_v20 }
 0x14a   : > { %6371 = vst [vmem:[#allocation23_spill] sm:$0xff] %v5307_v2  ;;  %v5314_v27 = vpop.permute.xlu0 %845  ;;  %v4087_v38 = vcombine.high %v5307_v2, %v5307_v2  ;;  %v1302_v61 = vrot.slane %v1294_v22, %v4733_v8 }
 0x14c   : > { %1355 = vrot.lane.b32.xlu1 %v4087_v38, %s4354_s12  ;;  %v3930_v52 = vcombine.low %v1302_v61, %v1302_v61  ;;  %v4088_v18 = vcombine.high %v1302_v61, %v1302_v61 }
 0x14d   : > { %v5320_v31 = vpop.permute.xlu1 %847  ;;  %1315 = vrot.lane.b32.xlu0 %v3923_v44, %s4357_s21 }
 0x14e   : > { %v5323_v53 = vpop.permute.xlu0 %849 }
 0x150   : > { %1350 = vrot.lane.b32.xlu1 %v3930_v52, %s4357_s21 }
 0x151   : > { %v5326_v59 = vpop.permute.xlu1 %851  ;;  %1325 = vrot.lane.b32.xlu0 %v4084_v5, %s4358_s22 }
 0x152   : > { %v5329_v46 = vpop.permute.xlu0 %3288 }
 0x154   : > { %1360 = vrot.lane.b32.xlu1 %v4088_v18, %s4358_s22 }
 0x155   : > { %v5332_v32 = vpop.permute.xlu1 %3290 }
 0x156   : > { %v5334_v12 = vpop.permute.xlu0 %3292 }
 0x157   : > { %v3306_v40 = vpack.i.b16 %v5334_v12, %v5329_v46  ;;  %v3308_v34 = vshrl.u32 %v5334_v12, 16 }
 0x159   : > { %v5336_v33 = vpop.permute.xlu1 %3294  ;;  %v3335_v58 = vrot.slane %v3306_v40, %v4724_v57 }
 0x15a   : > { %v3297_v50 = vpop.permute.xlu0 %3296  ;;  %v3318_v9 = vpack.i.b16 %v5336_v33, %v5332_v32 }
 0x15b   : > { %v3313_v16 = vshrl.u32 %v3297_v50, 16 }
 0x15c   : > { %v3403_v22 = vrot.slane %v3318_v9, %v4724_v57 }
 0x15d   : > { %v5340_v1 = vpop.permute.xlu1 %3298 }
 0x15e   : > { %v3301_v48 = vpop.permute.xlu0 %3300  ;;  %v3325_v12 = vshrl.u32 %v5340_v1, 16 }
 0x15f   : > { %v3312_v37 = vpack.i.b16 %v3301_v48, %v3297_v50 }
 0x161   : > { %v3343_v60 = vrot.slane %v3312_v37, %v4724_v57  ;;  %v3303_v30 = vpop.permute.xlu1 %3302 }
 0x162   : > { %v3324_v0 = vpack.i.b16 %v3303_v30, %v5340_v1  ;;  %v5347_v39 = vpop.permute.xlu0 %2953 }
 0x163   : > { %v3344_v7 = vcombine.low %v3335_v58, %v3343_v60  ;;  %v3345_v20 = vcombine.high %v3335_v58, %v3343_v60 }
 0x164   : > { %v3411_v38 = vrot.slane %v3324_v0, %v4724_v57 }
 0x165   : > { %v5351_v61 = vpop.permute.xlu1 %2955  ;;  %v5354_v44 = vrot.slane %v3344_v7, %v4733_v8  ;;  %v3359_v37 = vrot.slane %v3345_v20, %v4733_v8 }
 0x166   : > { %v3412_v52 = vcombine.low %v3403_v22, %v3411_v38  ;;  %v3413_v5 = vcombine.high %v3403_v22, %v3411_v38  ;;  %v5356_v18 = vpop.permute.xlu0 %2957 }
 0x167   : > { %6372 = vst [vmem:[#allocation24_spill] sm:$0xff] %v5354_v44  ;;  %v4131_v40 = vcombine.high %v5354_v44, %v5354_v44  ;;  %v4028_v22 = vcombine.low %v3359_v37, %v3359_v37  ;;  %v2971_v20 = vpack.i.b16 %v5356_v18, %v5347_v39 }
 0x168   : > { %v5362_v58 = vrot.slane %v3412_v52, %v4733_v8  ;;  %v5372_v7 = vrot.slane %v3413_v5, %v4733_v8 }
 0x169   : > { %v5364_v9 = vpop.permute.xlu1 %2959  ;;  %3472 = vrot.lane.b32.xlu0 %v4131_v40, %s4354_s12 }
 0x16a   : > { %6373 = vst [vmem:[#allocation25_spill] sm:$0xff] %v5362_v58  ;;  %v5367_v60 = vpop.permute.xlu0 %2961  ;;  %v4135_v0 = vcombine.high %v5362_v58, %v5362_v58  ;;  %v4035_v40 = vcombine.low %v5372_v7, %v5372_v7  ;;  %v2983_v5 = vpack.i.b16 %v5364_v9, %v5351_v61  ;;  %v3307_v58 = vshrl.u32 %v5329_v46, 16 }
 0x16c   : > { %3507 = vrot.lane.b32.xlu1 %v4135_v0, %s4354_s12  ;;  %v3000_v0 = vrot.slane %v2971_v20, %v4724_v57  ;;  %v3068_v51 = vrot.slane %v2983_v5, %v4724_v57 }
 0x16d   : > { %v5377_v38 = vpop.permute.xlu1 %2963  ;;  %3482 = vrot.lane.b32.xlu0 %v4028_v22, %s4355_s13  ;;  %v3314_v22 = vshrl.u32 %v3301_v48, 16 }
 0x16e   : > { %v2966_v52 = vpop.permute.xlu0 %2965 }
 0x16f   : > { %v2977_v14 = vpack.i.b16 %v2966_v52, %v5367_v60  ;;  %v3315_v48 = vpack.i.b16 %v3314_v22, %v3313_v16  ;;  %v2979_v1 = vshrl.u32 %v2966_v52, 16  ;;  %v4133_v22 = vcombine.high %v3359_v37, %v3359_v37 }
 0x170   : > { %3517 = vrot.lane.b32.xlu1 %v4035_v40, %s4355_s13 }
 0x171   : > { %v3008_v19 = vrot.slane %v2977_v14, %v4724_v57  ;;  %v2968_v25 = vpop.permute.xlu1 %2967  ;;  %v3326_v14 = vshrl.u32 %v3303_v30, 16  ;;  %v3319_v30 = vshrl.u32 %v5332_v32, 16  ;;  %v2973_v32 = vshrl.u32 %v5356_v18, 16 }
 0x172   : > { %v2989_v28 = vpack.i.b16 %v2968_v25, %v5377_v38  ;;  %v5389_v17 = vpop.permute.xlu0 %1905  ;;  %v2972_v18 = vshrl.u32 %v5347_v39, 16 }
 0x173   : > { %v3009_v10 = vcombine.low %v3000_v0, %v3008_v19  ;;  %v3010_v44 = vcombine.high %v3000_v0, %v3008_v19  ;;  %v3327_v46 = vpack.i.b16 %v3326_v14, %v3325_v12 }
 0x174   : > { %v3076_v42 = vrot.slane %v2989_v28, %v4724_v57  ;;  %v3320_v28 = vshrl.u32 %v5336_v33, 16  ;;  %v5418_v33 = vrot.slane %v3315_v48, %v4724_v57  ;;  %v2991_v48 = vshrl.u32 %v2968_v25, 16 }
 0x175   : > { %v5394_v2 = vpop.permute.xlu1 %1907  ;;  %v5397_v20 = vrot.slane %v3009_v10, %v4733_v8  ;;  %v3309_v10 = vpack.i.b16 %v3308_v34, %v3307_v58  ;;  %v3024_v34 = vrot.slane %v3010_v44, %v4733_v8  ;;  %v3445_v14 = vrot.slane %v3327_v46, %v4724_v57 }
 0x176   : > { %v3077_v40 = vcombine.low %v3068_v51, %v3076_v42  ;;  %v5399_v43 = vpop.permute.xlu0 %1909  ;;  %v3078_v16 = vcombine.high %v3068_v51, %v3076_v42  ;;  %v3321_v58 = vpack.i.b16 %v3320_v28, %v3319_v30  ;;  %v2978_v42 = vshrl.u32 %v5367_v60, 16 }
 0x177   : > { %6374 = vst [vmem:[#allocation26_spill] sm:$0xff] %v5397_v20  ;;  %v4123_v5 = vcombine.high %v5397_v20, %v5397_v20  ;;  %v4137_v44 = vcombine.high %v5372_v7, %v5372_v7  ;;  %v4009_v60 = vcombine.low %v3024_v34, %v3024_v34  ;;  %v2990_v30 = vshrl.u32 %v5377_v38, 16 }
 0x178   : > { %v5407_v50 = vrot.slane %v3077_v40, %v4733_v8  ;;  %v3369_v40 = vrot.slane %v3309_v10, %v4724_v57  ;;  %v3092_v37 = vrot.slane %v3078_v16, %v4733_v8  ;;  %v2980_v28 = vpack.i.b16 %v2979_v1, %v2978_v42 }
 0x179   : > { %v5409_v55 = vpop.permute.xlu1 %1911  ;;  %3137 = vrot.lane.b32.xlu0 %v4123_v5, %s4354_s12  ;;  %v3437_v12 = vrot.slane %v3321_v58, %v4724_v57  ;;  %v2985_v10 = vshrl.u32 %v5364_v9, 16  ;;  %v2974_v25 = vpack.i.b16 %v2973_v32, %v2972_v18  ;;  %v2984_v16 = vshrl.u32 %v5351_v61, 16 }
 0x17a   : > { %6375 = vst [vmem:[#allocation27_spill] sm:$0xff] %v5407_v50  ;;  %v5413_v19 = vpop.permute.xlu0 %1913  ;;  %v4127_v0 = vcombine.high %v5407_v50, %v5407_v50  ;;  %v3378_v5 = vcombine.low %v3369_v40, %v5418_v33  ;;  %v4016_v1 = vcombine.low %v3092_v37, %v3092_v37  ;;  %v4125_v58 = vcombine.high %v3024_v34, %v3024_v34 }
 0x17b   : > { %v3446_v7 = vcombine.low %v3437_v12, %v3445_v14  ;;  %v2986_v38 = vpack.i.b16 %v2985_v10, %v2984_v16  ;;  %v3034_v32 = vrot.slane %v2974_v25, %v4724_v57  ;;  %v3379_v16 = vcombine.high %v3369_v40, %v5418_v33 }
 0x17c   : > { %3172 = vrot.lane.b32.xlu1 %v4127_v0, %s4354_s12  ;;  %v2992_v0 = vpack.i.b16 %v2991_v48, %v2990_v30  ;;  %v3386_v9 = vrot.slane %v3378_v5, %v4733_v8 }
 0x17d   : > { %v5425_v51 = vpop.permute.xlu1 %1915  ;;  %3492 = vrot.lane.b32.xlu0 %v4133_v22, %s4356_s14  ;;  %v3042_v22 = vrot.slane %v2980_v28, %v4724_v57  ;;  %v3454_v18 = vrot.slane %v3446_v7, %v4733_v8  ;;  %v3102_v5 = vrot.slane %v2986_v38, %v4724_v57  ;;  %v3393_v50 = vrot.slane %v3379_v16, %v4733_v8 }
 0x17e   : > { %v5429_v52 = vpop.permute.xlu0 %1917  ;;  %v3110_v61 = vrot.slane %v2992_v0, %v4724_v57  ;;  %v4025_v34 = vcombine.low %v3386_v9, %v3386_v9  ;;  %v4132_v0 = vcombine.high %v3386_v9, %v3386_v9 }
 0x17f   : > { %v3043_v28 = vcombine.low %v3034_v32, %v3042_v22  ;;  %v4032_v25 = vcombine.low %v3454_v18, %v3454_v18  ;;  %v4136_v38 = vcombine.high %v3454_v18, %v3454_v18  ;;  %v1929_v16 = vpack.i.b16 %v5429_v52, %v5413_v19 }
 0x180   : > { %3527 = vrot.lane.b32.xlu1 %v4137_v44, %s4356_s14  ;;  %v4129_v44 = vcombine.high %v3092_v37, %v3092_v37  ;;  %v3111_v10 = vcombine.low %v3102_v5, %v3110_v61 }
 0x181   : > { %v5440_v46 = vpop.permute.xlu1 %1919  ;;  %3147 = vrot.lane.b32.xlu0 %v4009_v60, %s4355_s13  ;;  %v3051_v37 = vrot.slane %v3043_v28, %v4733_v8 }
 0x182   : > { %v5444_v39 = vpop.permute.xlu0 %2296 }
 0x184   : > { %3182 = vrot.lane.b32.xlu1 %v4016_v1, %s4355_s13  ;;  %v3447_v1 = vcombine.high %v3437_v12, %v3445_v14 }
 0x185   : > { %v5450_v42 = vpop.permute.xlu1 %2298  ;;  %3157 = vrot.lane.b32.xlu0 %v4125_v58, %s4356_s14 }
 0x186   : > { %v5454_v48 = vpop.permute.xlu0 %2300  ;;  %v3461_v28 = vrot.slane %v3447_v1, %v4733_v8  ;;  %v1923_v1 = vpack.i.b16 %v5399_v43, %v5389_v17 }
 0x188   : > { %3192 = vrot.lane.b32.xlu1 %v4129_v44, %s4356_s14  ;;  %v3119_v44 = vrot.slane %v3111_v10, %v4733_v8  ;;  %v4036_v18 = vcombine.low %v3461_v28, %v3461_v28  ;;  %v3044_v10 = vcombine.high %v3034_v32, %v3042_v22  ;;  %v5496_v32 = vrot.slane %v1929_v16, %v4724_v57 }
 0x189   : > { %v5459_v60 = vpop.permute.xlu1 %2302  ;;  %3467 = vrot.lane.b32.xlu0 %v4025_v34, %s4357_s21  ;;  %v4006_v34 = vcombine.low %v3051_v37, %v3051_v37 }
 0x18a   : > { %v5462_v30 = vpop.permute.xlu0 %2304  ;;  %v4013_v9 = vcombine.low %v3119_v44, %v3119_v44  ;;  %v4128_v22 = vcombine.high %v3119_v44, %v3119_v44  ;;  %v2314_v44 = vpack.i.b16 %v5454_v48, %v5444_v39 }
 0x18c   : > { %3502 = vrot.lane.b32.xlu1 %v4032_v25, %s4357_s21  ;;  %v4029_v25 = vcombine.low %v3393_v50, %v3393_v50 }
 0x18d   : > { %v5467_v7 = vpop.permute.xlu1 %2306  ;;  %3477 = vrot.lane.b32.xlu0 %v4132_v0, %s4358_s22  ;;  %v4124_v0 = vcombine.high %v3051_v37, %v3051_v37 }
 0x18e   : > { %v5470_v58 = vpop.permute.xlu0 %2308 }
 0x18f   : > { %v2320_v37 = vpack.i.b16 %v5470_v58, %v5462_v30 }
 0x190   : > { %3512 = vrot.lane.b32.xlu1 %v4136_v38, %s4358_s22  ;;  %v3112_v38 = vcombine.high %v3102_v5, %v3110_v61  ;;  %v4134_v61 = vcombine.high %v3393_v50, %v3393_v50  ;;  %v3058_v5 = vrot.slane %v3044_v10, %v4733_v8 }
 0x191   : > { %v5475_v33 = vpop.permute.xlu1 %2310  ;;  %3132 = vrot.lane.b32.xlu0 %v4006_v34, %s4357_s21  ;;  %v5521_v63 = vrot.slane %v2320_v37, %v4724_v57 }
 0x192   : > { %v2803_v40 = vpop.permute.xlu0 %2802  ;;  %v3126_v16 = vrot.slane %v3112_v38, %v4733_v8  ;;  %v2332_v10 = vpack.i.b16 %v5475_v33, %v5467_v7  ;;  %v4010_v15 = vcombine.low %v3058_v5, %v3058_v5  ;;  %v2326_v38 = vpack.i.b16 %v5459_v60, %v5450_v42 }
 0x193   : > { %v4126_v54 = vcombine.high %v3058_v5, %v3058_v5 }
 0x194   : > { %3167 = vrot.lane.b32.xlu1 %v4013_v9, %s4357_s21  ;;  %v1941_v9 = vpack.i.b16 %v5440_v46, %v5425_v51  ;;  %v5533_v6 = vrot.slane %v2332_v10, %v4724_v57  ;;  %v5545_v13 = vrot.slane %v2326_v38, %v4724_v57 }
 0x195   : > { %v2838_v14 = vpop.permute.xlu1 %2837  ;;  %3487 = vrot.lane.b32.xlu0 %v4029_v25, %s4359_s24 }
 0x196   : > { %v5481_v12 = vpop.permute.xlu0 %2812  ;;  %v5514_v50 = vrot.slane %v1941_v9, %v4724_v57  ;;  %v5528_v9 = vrot.slane %v2314_v44, %v4724_v57 }
 0x198   : > { %3522 = vrot.lane.b32.xlu1 %v4036_v18, %s4359_s24  ;;  %v1935_v18 = vpack.i.b16 %v5409_v55, %v5394_v2  ;;  %v2352_v44 = vcombine.low %v5528_v9, %v5521_v63 }
 0x199   : > { %v5488_v34 = vpop.permute.xlu1 %2847  ;;  %3142 = vrot.lane.b32.xlu0 %v4124_v0, %s4358_s22  ;;  %v5505_v0 = vrot.slane %v1923_v1, %v4724_v57 }
 0x19a   : > { %v5493_v25 = vpop.permute.xlu0 %2822 }
 0x19b   : > { %v1961_v1 = vcombine.low %v5505_v0, %v5496_v32 }
 0x19c   : > { %3177 = vrot.lane.b32.xlu1 %v4128_v22, %s4358_s22  ;;  %v4138_v22 = vcombine.high %v3461_v28, %v3461_v28  ;;  %v4017_v28 = vcombine.low %v3126_v16, %v3126_v16 }
 0x19d   : > { %v5509_v20 = vpop.permute.xlu1 %2857  ;;  %3497 = vrot.lane.b32.xlu0 %v4134_v61, %s4360_s26  ;;  %v2020_v61 = vrot.slane %v1935_v18, %v4724_v57 }
 0x19e   : > { %v2798_v41 = vpop.permute.xlu0 %2797 }
 0x19f   : > { %v2029_v37 = vcombine.low %v2020_v61, %v5514_v50  ;;  %v2866_v18 = vsel %vm777_vm5, %v5161_v3, %v2798_v41 }
 0x1a0   : > { %3532 = vrot.lane.b32.xlu1 %v4138_v22, %s4360_s26  ;;  %v2868_v10 = vsel %vm781_vm6, %v2866_v18, %v2803_v40  ;;  %v1962_v40 = vcombine.high %v5505_v0, %v5496_v32 }
 0x1a1   : > { %v2833_v21 = vpop.permute.xlu1 %2832  ;;  %3152 = vrot.lane.b32.xlu0 %v4010_v15, %s4359_s24  ;;  %v5542_v15 = vrot.slane %v1961_v1, %v4733_v8  ;;  %v5556_v26 = vrot.slane %v2029_v37, %v4733_v8 }
 0x1a2   : > { %v2881_v49 = vsel %vm777_vm5, %v5189_v45, %v2833_v21  ;;  %v2808_v22 = vpop.permute.xlu0 %2807  ;;  %v4130_v45 = vcombine.high %v3126_v16, %v3126_v16  ;;  %v2420_v21 = vcombine.low %v5545_v13, %v5533_v6  ;;  %v1930_v16 = vshrl.u32 %v5413_v19, 16 }
 0x1a3   : > { %v2883_v3 = vsel %vm781_vm6, %v2881_v49, %v2838_v14  ;;  %v2870_v5 = vsel %vm784_vm7, %v2868_v10, %v2808_v22  ;;  %v5563_v49 = vrot.slane %v2352_v44, %v4733_v8  ;;  %v1931_v14 = vshrl.u32 %v5429_v52, 16 }
 0x1a4   : > { %3187 = vrot.lane.b32.xlu1 %v4017_v28, %s4359_s24  ;;  %v2030_v28 = vcombine.high %v2020_v61, %v5514_v50  ;;  %v2872_v37 = vsel %vm787_vm8, %v2870_v5, %v5481_v12  ;;  %v4103_v22 = vcombine.high %v5556_v26, %v5556_v26  ;;  %v5579_v19 = vrot.slane %v2420_v21, %v4733_v8 }
 0x1a5   : > { %v2843_v41 = vpop.permute.xlu1 %2842  ;;  %3162 = vrot.lane.b32.xlu0 %v4126_v54, %s4360_s26  ;;  %v4099_v54 = vcombine.high %v5542_v15, %v5542_v15  ;;  %v2353_v50 = vcombine.high %v5528_v9, %v5521_v63  ;;  %v1976_v61 = vrot.slane %v1962_v40, %v4733_v8  ;;  %v1924_v44 = vshrl.u32 %v5389_v17, 16 }
 0x1a6   : > { %v2885_v1 = vsel %vm784_vm7, %v2883_v3, %v2843_v41  ;;  %v2818_v38 = vpop.permute.xlu0 %2817  ;;  %v1925_v10 = vshrl.u32 %v5399_v43, 16  ;;  %v1932_v3 = vpack.i.b16 %v1931_v14, %v1930_v16  ;;  %v1943_v41 = vshrl.u32 %v5440_v46, 16 }
 0x1a7   : > { %v2887_v32 = vsel %vm787_vm8, %v2885_v1, %v5488_v34  ;;  %v2874_v18 = vsel %vm790_vm9, %v2872_v37, %v2818_v38  ;;  %v4107_v34 = vcombine.high %v5563_v49, %v5563_v49  ;;  %v2044_v21 = vrot.slane %v2030_v28, %v4733_v8 }
 0x1a8   : > { %3197 = vrot.lane.b32.xlu1 %v4130_v45, %s4360_s26  ;;  %v2876_v45 = vsel %vm793_vm10, %v2874_v18, %v5493_v25  ;;  %v2421_v17 = vcombine.high %v5545_v13, %v5533_v6  ;;  %v4111_v46 = vcombine.high %v5579_v19, %v5579_v19  ;;  %v2322_v25 = vshrl.u32 %v5470_v58, 16 }
 0x1a9   : > { %v2853_v0 = vpop.permute.xlu1 %2852  ;;  %2089 = vrot.lane.b32.xlu0 %v4099_v54, %s4354_s12  ;;  %v3956_v38 = vcombine.low %v1976_v61, %v1976_v61  ;;  %v1937_v40 = vshrl.u32 %v5409_v55, 16  ;;  %v1942_v54 = vshrl.u32 %v5425_v51, 16  ;;  %v1936_v13 = vshrl.u32 %v5394_v2, 16 }
 0x1aa   : > { %v2889_v52 = vsel %vm790_vm9, %v2887_v32, %v2853_v0  ;;  %v2828_v12 = vpop.permute.xlu0 %2827  ;;  %v1926_v6 = vpack.i.b16 %v1925_v10, %v1924_v44  ;;  %v2316_v14 = vshrl.u32 %v5454_v48, 16  ;;  %v2321_v16 = vshrl.u32 %v5462_v30, 16 }
 0x1ab   : > { %v2891_v63 = vsel %vm793_vm10, %v2889_v52, %v5509_v20  ;;  %v2878_v43 = vsel %vm796_vm11, %v2876_v45, %v2828_v12  ;;  %v2367_v20 = vrot.slane %v2353_v50, %v4733_v8  ;;  %v1944_v58 = vpack.i.b16 %v1943_v41, %v1942_v54 }
 0x1ac   : > { %2124 = vrot.lane.b32.xlu1 %v4103_v22, %s4354_s12  ;;  %v2334_v28 = vshrl.u32 %v5475_v33, 16  ;;  %v3963_v37 = vcombine.low %v2044_v21, %v2044_v21  ;;  %v2435_v55 = vrot.slane %v2421_v17, %v4733_v8  ;;  %v1994_v51 = vrot.slane %v1932_v3, %v4724_v57 }
 0x1ad   : > { %v2863_v9 = vpop.permute.xlu1 %2862  ;;  %2480 = vrot.lane.b32.xlu0 %v4107_v34, %s4354_s12  ;;  %v2315_v32 = vshrl.u32 %v5444_v39, 16  ;;  %v2323_v0 = vpack.i.b16 %v2322_v25, %v2321_v16  ;;  %v3971_v2 = vcombine.low %v2367_v20, %v2367_v20  ;;  %v1938_v18 = vpack.i.b16 %v1937_v40, %v1936_v13 }
 0x1ae   : > { %v2893_v5 = vsel %vm796_vm11, %v2891_v63, %v2863_v9  ;;  %v2328_v48 = vshrl.u32 %v5459_v60, 16  ;;  %v2333_v30 = vshrl.u32 %v5467_v7, 16  ;;  %v1986_v52 = vrot.slane %v1926_v6, %v4724_v57  ;;  %v5633_v25 = vpop.permute.xlu0 %1698 }
 0x1af   : > { %v4001_v1 = vcombine.low %v2878_v43, %v2893_v5  ;;  %v2317_v22 = vpack.i.b16 %v2316_v14, %v2315_v32  ;;  %v2062_v33 = vrot.slane %v1944_v58, %v4724_v57  ;;  %v2327_v50 = vshrl.u32 %v5450_v42, 16  ;;  %6376 = vst [vmem:[#allocation28_spill] sm:$0xff] %v5633_v25 }
 0x1b0   : > { %2515 = vrot.lane.b32.xlu1 %v4111_v46, %s4354_s12  ;;  %v2335_v12 = vpack.i.b16 %v2334_v28, %v2333_v30  ;;  %v3978_v39 = vcombine.low %v2435_v55, %v2435_v55  ;;  %v1995_v34 = vcombine.low %v1986_v52, %v1994_v51  ;;  %v2385_v44 = vrot.slane %v2323_v0, %v4724_v57 }
 0x1b1   : > { %2900 = vst [vmem:[#allocation2 + $0x40] sm:$0x33] %v4001_v1  ;;  %2099 = vrot.lane.b32.xlu0 %v3956_v38, %s4355_s13  ;;  %v4101_v10 = vcombine.high %v1976_v61, %v1976_v61  ;;  %v2054_v60 = vrot.slane %v1938_v18, %v4724_v57  ;;  %v2329_v7 = vpack.i.b16 %v2328_v48, %v2327_v50 }
 0x1b2   : > { %v2377_v3 = vrot.slane %v2317_v22, %v4724_v57  ;;  %v2453_v45 = vrot.slane %v2335_v12, %v4724_v57  ;;  %v4105_v63 = vcombine.high %v2044_v21, %v2044_v21  ;;  %v4109_v9 = vcombine.high %v2367_v20, %v2367_v20  ;;  %v5638_v21 = vpop.permute.xlu1 %1733  ;;  %v5642_v13 = vpop.permute.xlu0 %1693  ;;  %v5664_v12 = vld [vmem:[#allocation3 + $0xc] sm:$0xf] }
 0x1b3   : > { %v2063_v41 = vcombine.low %v2054_v60, %v2062_v33  ;;  %v2003_v17 = vrot.slane %v1995_v34, %v4733_v8  ;;  %v2445_v43 = vrot.slane %v2329_v7, %v4724_v57  ;;  %v4113_v5 = vcombine.high %v2435_v55, %v2435_v55  ;;  %6377 = vst [vmem:[#allocation29_spill] sm:$0xff] %v5638_v21  ;;  %v5668_v34 = vld [vmem:[#allocation3 + $0x10] sm:$0xf]  ;;  %v5672_v7 = vld [vmem:[#allocation3 + $0x1c] sm:$0xf] }
 0x1b4   : > { %2134 = vrot.lane.b32.xlu1 %v3963_v37, %s4355_s13  ;;  %v2386_v42 = vcombine.low %v2377_v3, %v2385_v44  ;;  %v1996_v14 = vcombine.high %v1986_v52, %v1994_v51  ;;  %v2064_v28 = vcombine.high %v2054_v60, %v2062_v33  ;;  %v2387_v55 = vcombine.high %v2377_v3, %v2385_v44  ;;  %v5658_v33 = vld [vmem:[#allocation3 + $0x24] sm:$0xf]  ;;  %v5674_v3 = vld [vmem:[#allocation3 + $0x28] sm:$0xf] }
 0x1b5   : > { %2490 = vrot.lane.b32.xlu0 %v3971_v2, %s4355_s13  ;;  %v2454_v61 = vcombine.low %v2445_v43, %v2453_v45  ;;  %v2071_v46 = vrot.slane %v2063_v41, %v4733_v8  ;;  %v3953_v1 = vcombine.low %v2003_v17, %v2003_v17  ;;  %v4100_v16 = vcombine.high %v2003_v17, %v2003_v17  ;;  %v5683_v17 = vld [vmem:[#allocation3 + $0x4] sm:$0xf] }
 0x1b6   : > { %v2394_v38 = vrot.slane %v2386_v42, %v4733_v8  ;;  %v5645_v58 = vpop.permute.xlu1 %1728  ;;  %v5649_v32 = vpop.permute.xlu0 %1703  ;;  %v2010_v2 = vrot.slane %v1996_v14, %v4733_v8  ;;  %v2455_v51 = vcombine.high %v2445_v43, %v2453_v45  ;;  %v2078_v30 = vrot.slane %v2064_v28, %v4733_v8  ;;  %v5676_v45 = vld [vmem:[#allocation3] sm:$0xf] }
 0x1b7   : > { %v3960_v20 = vcombine.low %v2071_v46, %v2071_v46  ;;  %v2462_v40 = vrot.slane %v2454_v61, %v4733_v8  ;;  %v4104_v37 = vcombine.high %v2071_v46, %v2071_v46  ;;  %6378 = vst [vmem:[#allocation30_spill] sm:$0xff] %v5649_v32  ;;  %v2401_v22 = vrot.slane %v2387_v55, %v4733_v8 }
 0x1b8   : > { %2525 = vrot.lane.b32.xlu1 %v3978_v39, %s4355_s13  ;;  %v3968_v54 = vcombine.low %v2394_v38, %v2394_v38  ;;  %v4108_v0 = vcombine.high %v2394_v38, %v2394_v38  ;;  %v3957_v52 = vcombine.low %v2010_v2, %v2010_v2  ;;  %v5666_v39 = vld [vmem:[#allocation3 + $0x18] sm:$0xf]  ;;  %v3964_v44 = vcombine.low %v2078_v30, %v2078_v30 }
 0x1b9   : > { %2109 = vrot.lane.b32.xlu0 %v4101_v10, %s4356_s14  ;;  %v3975_v6 = vcombine.low %v2462_v40, %v2462_v40  ;;  %v4112_v48 = vcombine.high %v2462_v40, %v2462_v40  ;;  %v2469_v10 = vrot.slane %v2455_v51, %v4733_v8  ;;  %v557_v60 = vshrl.u32 %v5658_v33, 16 }
 0x1ba   : > { %v5654_v18 = vpop.permute.xlu1 %1738  ;;  %v3972_v41 = vcombine.low %v2401_v22, %v2401_v22  ;;  %v551_v42 = vshrl.u32 %v5664_v12, 16  ;;  %v563_v43 = vshrl.u32 %v5668_v34, 16  ;;  %v568_v61 = vshrl.u32 %v5672_v7, 16 }
 0x1bb   : > { %6379 = vst [vmem:[#allocation31_spill] sm:$0xff] %v5654_v18  ;;  %v5661_v50 = vpop.permute.xlu0 %1320  ;;  %v3979_v46 = vcombine.low %v2469_v10, %v2469_v10  ;;  %v862_v28 = vshrl.u32 %v5314_v27, 16 }
 0x1bc   : > { %2144 = vrot.lane.b32.xlu1 %v4105_v63, %s4356_s14 }
 0x1bd   : > { %2500 = vrot.lane.b32.xlu0 %v4109_v9, %s4356_s14  ;;  %v556_v9 = vshrl.u32 %v5666_v39, 16 }
 0x1be   : > { %v5678_v63 = vpop.permute.xlu1 %1355 }
 0x1bf   : > { %v558_v38 = vpack.i.b16 %v557_v60, %v556_v9  ;;  %v5691_v40 = vpop.permute.xlu0 %1315  ;;  %v4110_v60 = vcombine.high %v2401_v22, %v2401_v22  ;;  %v869_v9 = vshrl.u32 %v5311_v11, 16 }
 0x1c0   : > { %2535 = vrot.lane.b32.xlu1 %v4113_v5, %s4356_s14  ;;  %v569_v5 = vshrl.u32 %v5674_v3, 16 }
 0x1c1   : > { %2084 = vrot.lane.b32.xlu0 %v3953_v1, %s4357_s21  ;;  %v550_v1 = vshrl.u32 %v5676_v45, 16 }
 0x1c2   : > { %v570_v55 = vpack.i.b16 %v569_v5, %v568_v61  ;;  %v5699_v51 = vpop.permute.xlu1 %1350 }
 0x1c3   : > { %v552_v14 = vpack.i.b16 %v551_v42, %v550_v1  ;;  %v5714_v61 = vpop.permute.xlu0 %1325  ;;  %v4114_v1 = vcombine.high %v2469_v10, %v2469_v10 }
 0x1c4   : > { %2119 = vrot.lane.b32.xlu1 %v3960_v20, %s4357_s21  ;;  %v863_v20 = vshrl.u32 %v5323_v53, 16  ;;  %6381 = vst [vmem:[#allocation32_spill] sm:$0xff] %v5714_v61 }
 0x1c5   : > { %2475 = vrot.lane.b32.xlu0 %v3968_v54, %s4357_s21  ;;  %v4102_v54 = vcombine.high %v2010_v2, %v2010_v2  ;;  %v5702_v2 = vrot.slane %v558_v38, %v4724_v57  ;;  %v5718_v5 = vrot.slane %v552_v14, %v4724_v57  ;;  %v6382_v38 = vcombine.high %v5273_v24, %v5276_v62 }
 0x1c6   : > { %v6383_v14 = vcombine.high %v5117_v4, %v5102_v56  ;;  %v6385_v4 = vld [vmem:[#allocation12_spill] sm:$0xff] }
 0x1c7   : > { %v621_v10 = vcombine.low %v5718_v5, %v5702_v2 }
 0x1c8   : > { %2510 = vrot.lane.b32.xlu1 %v3975_v6, %s4357_s21  ;;  %v562_v6 = vshrl.u32 %v5683_v17, 16 }
 0x1c9   : > { %2094 = vrot.lane.b32.xlu0 %v4100_v16, %s4358_s22  ;;  %v857_v16 = vshrl.u32 %v5298_v29, 16 }
 0x1cc   : > { %2129 = vrot.lane.b32.xlu1 %v4104_v37, %s4358_s22  ;;  %v564_v37 = vpack.i.b16 %v563_v43, %v562_v6  ;;  %v874_v43 = vshrl.u32 %v5320_v31, 16 }
 0x1cd   : > { %2485 = vrot.lane.b32.xlu0 %v4108_v0, %s4358_s22  ;;  %v875_v0 = vshrl.u32 %v5326_v59, 16 }
 0x1ce   : > { %v5721_v22 = vrot.slane %v564_v37, %v4724_v57  ;;  %v5746_v37 = vpop.permute.xlu1 %1360 }
 0x1cf   : > { %6384 = vst [vmem:[#allocation33_spill] sm:$0xff] %v5746_v37 }
 0x1d0   : > { %2520 = vrot.lane.b32.xlu1 %v4112_v48, %s4358_s22  ;;  %v4106_v48 = vcombine.high %v2078_v30, %v2078_v30 }
 0x1d1   : > { %2104 = vrot.lane.b32.xlu0 %v3957_v52, %s4359_s24  ;;  %v856_v52 = vshrl.u32 %v5259_v35, 16 }
 0x1d3   : > { %v858_v30 = vpack.i.b16 %v857_v16, %v856_v52  ;;  %v5742_v16 = vrot.slane %v6383_v14, %v4733_v8 }
 0x1d4   : > { %2139 = vrot.lane.b32.xlu1 %v3964_v44, %s4359_s24  ;;  %v864_v44 = vpack.i.b16 %v863_v20, %v862_v28  ;;  %v5731_v20 = vrot.slane %v6382_v38, %v4733_v8 }
 0x1d5   : > { %2495 = vrot.lane.b32.xlu0 %v3972_v41, %s4359_s24  ;;  %v6380_v41 = vcombine.high %v5254_v36, %v5257_v23  ;;  %v5724_v36 = vrot.slane %v570_v55, %v4724_v57  ;;  %v868_v23 = vshrl.u32 %v5281_v47, 16  ;;  %v5750_v24 = vrot.slane %v858_v30, %v4724_v57 }
 0x1d6   : > { %v3933_v56 = vcombine.low %v5731_v20, %v5731_v20 }
 0x1d7   : > { %v5709_v42 = vrot.slane %v6380_v41, %v4733_v8  ;;  %v870_v28 = vpack.i.b16 %v869_v9, %v868_v23  ;;  %v3941_v41 = vcombine.low %v5742_v16, %v5742_v16  ;;  %v5773_v9 = vrot.slane %v621_v10, %v4733_v8 }
 0x1d8   : > { %2530 = vrot.lane.b32.xlu1 %v3979_v46, %s4359_s24  ;;  %v876_v46 = vpack.i.b16 %v875_v0, %v874_v43  ;;  %v6386_v0 = vld [vmem:[#allocation13_spill] sm:$0xff]  ;;  %v555_v10 = vpack.i.b16 %v5658_v33, %v5666_v39  ;;  %v567_v33 = vpack.i.b16 %v5674_v3, %v5672_v7  ;;  %v861_v39 = vpack.i.b16 %v5323_v53, %v5314_v27 }
 0x1d9   : > { %2114 = vrot.lane.b32.xlu0 %v4102_v54, %s4360_s26  ;;  %v5734_v54 = vrot.slane %v864_v44, %v4724_v57  ;;  %v3926_v6 = vcombine.low %v5709_v42, %v5709_v42  ;;  %v689_v44 = vcombine.low %v5721_v22, %v5724_v36  ;;  %v5776_v43 = vrot.slane %v870_v28, %v4724_v57 }
 0x1da   : > { %v5756_v55 = vrot.slane %v876_v46, %v4724_v57  ;;  %v549_v28 = vpack.i.b16 %v5664_v12, %v5676_v45  ;;  %v6389_v45 = vld [vmem:[#allocation19_spill] sm:$0xff]  ;;  %v855_v7 = vpack.i.b16 %v5298_v29, %v5259_v35  ;;  %v873_v3 = vpack.i.b16 %v5326_v59, %v5320_v31  ;;  %v6394_v59 = vld [vmem:[#allocation10_spill] sm:$0xff] }
 0x1db   : > { %v5752_v62 = vpop.permute.xlu0 %3472 }
 0x1dc   : > { %2149 = vrot.lane.b32.xlu1 %v4106_v48, %s4360_s26  ;;  %v6387_v48 = vcombine.high %v6385_v4, %v6386_v0  ;;  %v995_v23 = vcombine.low %v5776_v43, %v5756_v55  ;;  %v5833_v27 = vrot.slane %v549_v28, %v4724_v57  ;;  %v5851_v28 = vrot.slane %v567_v33, %v4724_v57 }
 0x1dd   : > { %2505 = vrot.lane.b32.xlu0 %v4110_v60, %s4360_s26  ;;  %v927_v60 = vcombine.low %v5750_v24, %v5734_v54  ;;  %v867_v33 = vpack.i.b16 %v5311_v11, %v5281_v47 }
 0x1de   : > { %v5764_v52 = vrot.slane %v6387_v48, %v4733_v8  ;;  %v5778_v30 = vpop.permute.xlu1 %3507  ;;  %v5809_v48 = vrot.slane %v995_v23, %v4733_v8 }
 0x1df   : > { %v5789_v38 = vpop.permute.xlu0 %3482  ;;  %v5794_v14 = vrot.slane %v927_v60, %v4733_v8  ;;  %v5900_v18 = vrot.slane %v867_v33, %v4724_v57 }
 0x1e0   : > { %2540 = vrot.lane.b32.xlu1 %v4114_v1, %s4360_s26  ;;  %v3948_v46 = vcombine.low %v5764_v52, %v5764_v52  ;;  %v5787_v1 = vrot.slane %v689_v44, %v4733_v8 }
 0x1e1   : > { %1330 = vrot.lane.b32.xlu0 %v3926_v6, %s4355_s13  ;;  %v3893_v6 = vcombine.low %v5773_v9, %v5773_v9  ;;  %v3908_v12 = vcombine.low %v5794_v14, %v5794_v14 }
 0x1e2   : > { %v5804_v4 = vpop.permute.xlu1 %3517  ;;  %v3900_v0 = vcombine.low %v5787_v1, %v5787_v1 }
 0x1e4   : > { %1365 = vrot.lane.b32.xlu1 %v3933_v56, %s4355_s13  ;;  %v561_v56 = vpack.i.b16 %v5668_v34, %v5683_v17  ;;  %v6388_v34 = vld [vmem:[#allocation18_spill] sm:$0xff] }
 0x1e5   : > { %1708 = vrot.lane.b32.xlu0 %v3941_v41, %s4355_s13  ;;  %v6390_v17 = vcombine.high %v6388_v34, %v6389_v45  ;;  %v5826_v41 = vrot.slane %v555_v10, %v4724_v57  ;;  %v6392_v10 = vld [vmem:[#allocation22_spill] sm:$0xff] }
 0x1e6   : > { %v5836_v53 = vrot.slane %v561_v56, %v4724_v57  ;;  %v5854_v56 = vrot.slane %v861_v39, %v4724_v57  ;;  %v5872_v39 = vrot.slane %v855_v7, %v4724_v57 }
 0x1e7   : > { %v5823_v60 = vrot.slane %v6390_v17, %v4733_v8  ;;  %v587_v17 = vcombine.low %v5833_v27, %v5826_v41 }
 0x1e8   : > { %1743 = vrot.lane.b32.xlu1 %v3948_v46, %s4355_s13  ;;  %v3915_v46 = vcombine.low %v5809_v48, %v5809_v48  ;;  %v655_v11 = vcombine.low %v5836_v53, %v5851_v28  ;;  %v893_v7 = vcombine.low %v5872_v39, %v5854_v56 }
 0x1e9   : > { %710 = vrot.lane.b32.xlu0 %v3893_v6, %s4357_s21  ;;  %v6391_v6 = vld [vmem:[#allocation21_spill] sm:$0xff]  ;;  %v3927_v31 = vcombine.low %v5823_v60, %v5823_v60 }
 0x1ea   : > { %v6393_v35 = vcombine.high %v6391_v6, %v6392_v10  ;;  %v5876_v6 = vrot.slane %v873_v3, %v4724_v57  ;;  %v5911_v32 = vrot.slane %v655_v11, %v4733_v8  ;;  %v5918_v33 = vrot.slane %v893_v7, %v4733_v8 }
 0x1eb   : > { %v5815_v44 = vpop.permute.xlu0 %3137 }
 0x1ec   : > { %745 = vrot.lane.b32.xlu1 %v3900_v0, %s4357_s21  ;;  %v5848_v29 = vrot.slane %v6393_v35, %v4733_v8  ;;  %6401 = vst [vmem:[#allocation13_spill] sm:$0xff] %v5911_v32  ;;  %6402 = vst [vmem:[#allocation18_spill] sm:$0xff] %v5918_v33  ;;  %v4075_v25 = vcombine.high %v5918_v33, %v5918_v33  ;;  %v4089_v33 = vcombine.high %v5731_v20, %v5731_v20 }
 0x1ed   : > { %1016 = vrot.lane.b32.xlu0 %v3908_v12, %s4357_s21  ;;  %v6395_v12 = vld [vmem:[#allocation14_spill] sm:$0xff]  ;;  %v4068_v20 = vcombine.high %v5773_v9, %v5773_v9  ;;  %v4076_v9 = vcombine.high %v5794_v14, %v5794_v14  ;;  %v4086_v14 = vcombine.high %v5823_v60, %v5823_v60 }
 0x1ee   : > { %v5840_v23 = vpop.permute.xlu1 %3172  ;;  %v6396_v34 = vcombine.high %v6394_v59, %v6395_v12  ;;  %v3934_v35 = vcombine.low %v5848_v29, %v5848_v29  ;;  %v6397_v59 = vld [vmem:[#allocation15_spill] sm:$0xff]  ;;  %v6398_v12 = vld [vmem:[#allocation16_spill] sm:$0xff] }
 0x1ef   : > { %v5856_v0 = vpop.permute.xlu0 %3492 }
 0x1f0   : > { %v5864_v45 = vrot.slane %v6396_v34, %v4733_v8  ;;  %1051 = vrot.lane.b32.xlu1 %v3915_v46, %s4357_s21  ;;  %v6399_v34 = vcombine.high %v6397_v59, %v6398_v12  ;;  %v961_v59 = vcombine.low %v5900_v18, %v5876_v6 }
 0x1f1   : > { %1335 = vrot.lane.b32.xlu0 %v3927_v31, %s4359_s24  ;;  %v5897_v31 = vrot.slane %v587_v17, %v4733_v8 }
 0x1f2   : > { %v5878_v10 = vpop.permute.xlu1 %3527  ;;  %v5886_v47 = vrot.slane %v6399_v34, %v4733_v8  ;;  %v3942_v3 = vcombine.low %v5864_v45, %v5864_v45  ;;  %v5927_v11 = vrot.slane %v961_v59, %v4733_v8 }
 0x1f3   : > { %v5892_v46 = vpop.permute.xlu0 %3147  ;;  %6400 = vst [vmem:[#allocation12_spill] sm:$0xff] %v5897_v31  ;;  %v4067_v57 = vcombine.high %v5897_v31, %v5897_v31  ;;  %v4085_v31 = vcombine.high %v5709_v42, %v5709_v42  ;;  %v4097_v42 = vcombine.high %v5764_v52, %v5764_v52 }
 0x1f4   : > { %1370 = vrot.lane.b32.xlu1 %v3934_v35, %s4359_s24  ;;  %v3949_v34 = vcombine.low %v5886_v47, %v5886_v47  ;;  %6403 = vst [vmem:[#allocation19_spill] sm:$0xff] %v5927_v11 }
 0x1f5   : > { %1713 = vrot.lane.b32.xlu0 %v3942_v3, %s4359_s24  ;;  %v4071_v3 = vcombine.high %v5911_v32, %v5911_v32 }
 0x1f6   : > { %v5906_v12 = vpop.permute.xlu1 %3182 }
 0x1f7   : > { %v5913_v17 = vpop.permute.xlu0 %3157 }
 0x1f8   : > { %1748 = vrot.lane.b32.xlu1 %v3949_v34, %s4359_s24  ;;  %v4079_v34 = vcombine.high %v5927_v11, %v5927_v11  ;;  %v6404_v11 = vld [vmem:[#allocation24_spill] sm:$0xff] }
 0x1f9   : > { %715 = vrot.lane.b32.xlu0 %v4067_v57, %s4354_s12 }
 0x1fa   : > { %v5922_v35 = vpop.permute.xlu1 %3192 }
 0x1fb   : > { %v3468_v21 = vpop.permute.xlu0 %3467 }
 0x1fc   : > { %750 = vrot.lane.b32.xlu1 %v4071_v3, %s4354_s12 }
 0x1fd   : > { %1021 = vrot.lane.b32.xlu0 %v4075_v25, %s4354_s12  ;;  %v4093_v25 = vcombine.high %v5742_v16, %v5742_v16 }
 0x1fe   : > { %v3503_v7 = vpop.permute.xlu1 %3502 }
 0x1ff   : > { %v3478_v57 = vpop.permute.xlu0 %3477 }
 0x200   : > { %1056 = vrot.lane.b32.xlu1 %v4079_v34, %s4354_s12  ;;  %v3536_v34 = vsel %vm777_vm5, %v6404_v11, %v3468_v21  ;;  %v4072_v21 = vcombine.high %v5787_v1, %v5787_v1 }
 0x201   : > { %1340 = vrot.lane.b32.xlu0 %v4085_v31, %s4356_s14  ;;  %v6405_v31 = vld [vmem:[#allocation25_spill] sm:$0xff]  ;;  %v3538_v16 = vsel %vm781_vm6, %v3536_v34, %v5752_v62  ;;  %v588_v62 = vcombine.high %v5833_v27, %v5826_v41  ;;  %v6407_v34 = vld [vmem:[#allocation27_spill] sm:$0xff] }
 0x202   : > { %v3513_v59 = vpop.permute.xlu1 %3512  ;;  %v3551_v37 = vsel %vm777_vm5, %v6405_v31, %v3503_v7  ;;  %v3540_v11 = vsel %vm784_vm7, %v3538_v16, %v3478_v57  ;;  %v4080_v57 = vcombine.high %v5809_v48, %v5809_v48  ;;  %v894_v48 = vcombine.high %v5872_v39, %v5854_v56 }
 0x203   : > { %v3133_v32 = vpop.permute.xlu0 %3132  ;;  %v3553_v52 = vsel %vm781_vm6, %v3551_v37, %v5778_v30  ;;  %v3542_v37 = vsel %vm787_vm8, %v3540_v11, %v5789_v38  ;;  %v5992_v60 = vrot.slane %v588_v62, %v4733_v8 }
 0x204   : > { %1375 = vrot.lane.b32.xlu1 %v4089_v33, %s4356_s14  ;;  %v3555_v7 = vsel %vm784_vm7, %v3553_v52, %v3513_v59  ;;  %v6406_v59 = vld [vmem:[#allocation26_spill] sm:$0xff] }
 0x205   : > { %1718 = vrot.lane.b32.xlu0 %v4093_v25, %s4356_s14  ;;  %v3557_v30 = vsel %vm787_vm8, %v3555_v7, %v5804_v4  ;;  %v4094_v4 = vcombine.high %v5864_v45, %v5864_v45 }
 0x206   : > { %v3168_v3 = vpop.permute.xlu1 %3167 }
 0x207   : > { %v3488_v61 = vpop.permute.xlu0 %3487  ;;  %v3216_v31 = vsel %vm777_vm5, %v6407_v34, %v3168_v3 }
 0x208   : > { %1753 = vrot.lane.b32.xlu1 %v4097_v42, %s4356_s14  ;;  %v3201_v42 = vsel %vm777_vm5, %v6406_v59, %v3133_v32  ;;  %v3544_v41 = vsel %vm790_vm9, %v3542_v37, %v3488_v61  ;;  %v4090_v32 = vcombine.high %v5848_v29, %v5848_v29  ;;  %v656_v61 = vcombine.high %v5836_v53, %v5851_v28 }
 0x209   : > { %720 = vrot.lane.b32.xlu0 %v4068_v20, %s4358_s22  ;;  %v3203_v3 = vsel %vm781_vm6, %v3201_v42, %v5815_v44  ;;  %v3218_v45 = vsel %vm781_vm6, %v3216_v31, %v5840_v23  ;;  %v3546_v56 = vsel %vm793_vm10, %v3544_v41, %v5856_v0  ;;  %v4098_v23 = vcombine.high %v5886_v47, %v5886_v47 }
 0x20a   : > { %v3523_v33 = vpop.permute.xlu1 %3522  ;;  %v622_v0 = vcombine.high %v5718_v5, %v5702_v2  ;;  %v670_v7 = vrot.slane %v656_v61, %v4733_v8  ;;  %v3896_v2 = vcombine.low %v5992_v60, %v5992_v60  ;;  %v996_v42 = vcombine.high %v5776_v43, %v5756_v55 }
 0x20b   : > { %v3143_v25 = vpop.permute.xlu0 %3142  ;;  %v3559_v38 = vsel %vm790_vm9, %v3557_v30, %v3523_v33 }
 0x20c   : > { %755 = vrot.lane.b32.xlu1 %v4072_v21, %s4358_s22  ;;  %v3561_v39 = vsel %vm793_vm10, %v3559_v38, %v5878_v10  ;;  %v3205_v29 = vsel %vm784_vm7, %v3203_v3, %v3143_v25  ;;  %v962_v10 = vcombine.high %v5900_v18, %v5876_v6  ;;  %v908_v18 = vrot.slane %v894_v48, %v4733_v8 }
 0x20d   : > { %1026 = vrot.lane.b32.xlu0 %v4076_v9, %s4358_s22  ;;  %v3207_v33 = vsel %vm787_vm8, %v3205_v29, %v5892_v46  ;;  %v636_v5 = vrot.slane %v622_v0, %v4733_v8  ;;  %v690_v6 = vcombine.high %v5721_v22, %v5724_v36  ;;  %v3903_v37 = vcombine.low %v670_v7, %v670_v7 }
 0x20e   : > { %v3178_v1 = vpop.permute.xlu1 %3177  ;;  %v976_v30 = vrot.slane %v962_v10, %v4733_v8  ;;  %v3911_v22 = vcombine.low %v908_v18, %v908_v18  ;;  %v1010_v43 = vrot.slane %v996_v42, %v4733_v8  ;;  %v4069_v29 = vcombine.high %v5992_v60, %v5992_v60 }
 0x20f   : > { %v3498_v27 = vpop.permute.xlu0 %3497  ;;  %v3220_v16 = vsel %vm784_vm7, %v3218_v45, %v3178_v1  ;;  %v928_v1 = vcombine.high %v5750_v24, %v5734_v54  ;;  %v3897_v38 = vcombine.low %v636_v5, %v636_v5  ;;  %v4070_v0 = vcombine.high %v636_v5, %v636_v5  ;;  %v3702_v5 = vld [vmem:[%s6292_s3] sm:$0xff] }
 0x210   : > { %1061 = vrot.lane.b32.xlu1 %v4080_v57, %s4358_s22  ;;  %v3548_v52 = vsel %vm796_vm11, %v3546_v56, %v3498_v27  ;;  %v3222_v21 = vsel %vm787_vm8, %v3220_v16, %v5906_v12  ;;  %v3918_v24 = vcombine.low %v976_v30, %v976_v30  ;;  %v4073_v16 = vcombine.high %v670_v7, %v670_v7 }
 0x211   : > { %1345 = vrot.lane.b32.xlu0 %v4086_v14, %s4360_s26  ;;  %v942_v27 = vrot.slane %v928_v1, %v4733_v8  ;;  %v4082_v7 = vcombine.high %v1010_v43, %v1010_v43 }
 0x212   : > { %v3533_v20 = vpop.permute.xlu1 %3532 }
 0x213   : > { %v3563_v53 = vsel %vm796_vm11, %v3561_v39, %v3533_v20  ;;  %v3153_v28 = vpop.permute.xlu0 %3152  ;;  %v3912_v61 = vcombine.low %v942_v27, %v942_v27  ;;  %v3919_v39 = vcombine.low %v1010_v43, %v1010_v43 }
 0x214   : > { %v4039_v44 = vcombine.low %v3548_v52, %v3563_v53  ;;  %1380 = vrot.lane.b32.xlu1 %v4090_v32, %s4360_s26  ;;  %v3209_v25 = vsel %vm790_vm9, %v3207_v33, %v3153_v28  ;;  %v4077_v53 = vcombine.high %v908_v18, %v908_v18  ;;  %v3686_v18 = vld [vmem:[%s6291_s2] sm:$0xff] }
 0x215   : > { %1723 = vrot.lane.b32.xlu0 %v4094_v4, %s4360_s26  ;;  %v3211_v46 = vsel %vm793_vm10, %v3209_v25, %v5913_v17 }
 0x216   : > { %3570 = vst [vmem:[#allocation2 + $0x8] sm:$0x33] %v4039_v44  ;;  %v3188_v11 = vpop.permute.xlu1 %3187  ;;  %v4081_v44 = vcombine.high %v976_v30, %v976_v30 }
 0x217   : > { %v3224_v47 = vsel %vm790_vm9, %v3222_v21, %v3188_v11  ;;  %v3163_v9 = vpop.permute.xlu0 %3162  ;;  %v4078_v21 = vcombine.high %v942_v27, %v942_v27 }
 0x218   : > { %1758 = vrot.lane.b32.xlu1 %v4098_v23, %s4360_s26  ;;  %v3226_v12 = vsel %vm793_vm10, %v3224_v47, %v5922_v35  ;;  %v3213_v57 = vsel %vm796_vm11, %v3211_v46, %v3163_v9  ;;  %v704_v35 = vrot.slane %v690_v6, %v4733_v8  ;;  %v3703_v6 = vld [vmem:[%s6292_s3 + $0x8] sm:$0xff] }
 0x219   : > { %725 = vrot.lane.b32.xlu0 %v3896_v2, %s4355_s13  ;;  %v3687_v2 = vld [vmem:[%s6291_s2 + $0x8] sm:$0xff] }
 0x21a   : > { %v3198_v62 = vpop.permute.xlu1 %3197  ;;  %v3904_v55 = vcombine.low %v704_v35, %v704_v35  ;;  %v4074_v10 = vcombine.high %v704_v35, %v704_v35 }
 0x21b   : > { %v3228_v14 = vsel %vm796_vm11, %v3226_v12, %v3198_v62  ;;  %v6040_v59 = vpop.permute.xlu0 %2089 }
 0x21c   : > { %v4020_v36 = vcombine.low %v3213_v57, %v3228_v14  ;;  %760 = vrot.lane.b32.xlu1 %v3903_v37, %s4355_s13 }
 0x21d   : > { %1031 = vrot.lane.b32.xlu0 %v3911_v22, %s4355_s13  ;;  %v3581_v17 = vld [vmem:[#allocation2 + $0x8] sm:$0xff] }
 0x21e   : > { %3235 = vst [vmem:[#allocation2 + $0x38] sm:$0x33] %v4020_v36  ;;  %v6047_v54 = vpop.permute.xlu1 %2124  ;;  %v4050_v34 = vcombine.high %v3581_v17, %v3581_v17  ;;  %v4049_v31 = vcombine.low %v3581_v17, %v3581_v17 }
 0x21f   : > { %v6049_v41 = vpop.permute.xlu0 %2480 }
 0x220   : > { %1066 = vrot.lane.b32.xlu1 %v3918_v24, %s4355_s13  ;;  %4051 = vmatprep.subr.msk.bf16.mxu0 %vm3636_vm12, %v4050_v34  ;;  %v3638_v4 = vsel %vm3636_vm12, %v4049_v31, 0 }
 0x221   : > { %3650 = vmatpush1.bf16.msra.mxu0 %v3638_v4  ;;  %730 = vrot.lane.b32.xlu0 %v3897_v38, %s4359_s24 }
 0x222   : > { %v6054_v48 = vpop.permute.xlu1 %2515 }
 0x223   : > { %v6057_v32 = vpop.permute.xlu0 %2099 }
 0x224   : > { %765 = vrot.lane.b32.xlu1 %v3904_v55, %s4359_s24 }
 0x225   : > { %1036 = vrot.lane.b32.xlu0 %v3912_v61, %s4359_s24  ;;  %v4222_v3 = vld [vmem:[#allocation2 + $0x44] ss:$-8 sps:$4 sm:$0xff]   ;;  %v4224_v45 = vld [vmem:[#allocation2 + $0x40] ss:$-8 sps:$4 sm:$0xff]  }
 0x226   : > { %v2135_v56 = vpop.permute.xlu1 %2134  ;;  %3651 = vmatprep.subr.bf16.mxu0 %v4222_v3 }
 0x227   : > { %v6061_v20 = vpop.permute.xlu0 %2490  ;;  %3652 = vmatpush1.bf16.msra.mxu0 %v4224_v45 }
 0x228   : > { %1071 = vrot.lane.b32.xlu1 %v3919_v39, %s4359_s24 }
 0x229   : > { %735 = vrot.lane.b32.xlu0 %v4069_v29, %s4356_s14 }
 0x22a   : > { %v2526_v8 = vpop.permute.xlu1 %2525 }
 0x22b   : > { %v2110_v52 = vpop.permute.xlu0 %2109 }
 0x22c   : > { %770 = vrot.lane.b32.xlu1 %v4073_v16, %s4356_s14 }
 0x22d   : > { %1041 = vrot.lane.b32.xlu0 %v4077_v53, %s4356_s14 }
 0x22e   : > { %v2145_v28 = vpop.permute.xlu1 %2144 }
 0x22f   : > { %v2501_v23 = vpop.permute.xlu0 %2500 }
 0x230   : > { %1076 = vrot.lane.b32.xlu1 %v4081_v44, %s4356_s14  ;;  %s3884_s14 = sshll.u32 %s4472_s6, 5 }
 0x231   : > { %740 = vrot.lane.b32.xlu0 %v4070_v0, %s4360_s26  ;;  %s277_s22 = scalar_lea.vmem [#allocation7], %s3884_s14 }
 0x232   : > { %v2536_v60 = vpop.permute.xlu1 %2535  ;;  %s3743_s24 = sshll.u32 %s277_s22, 4  ;;  %s6235_s24 = int_to_ptr.vmem [resolvable:$true] %s3743_s24 }
 0x233   : > { %v2085_v33 = vpop.permute.xlu0 %2084  ;;  %s4263_s9 = scalar_lea.vmem %s6235_s24, 512 }
 0x234   : > { %775 = vrot.lane.b32.xlu1 %v4074_v10, %s4360_s26  ;;  %v2153_v37 = vsel %vm777_vm5, %v5542_v15, %v2085_v33  ;;  %p4264_p8 = scmp.ne.s32.totalorder %s6235_s24, %s4263_s9 }
 0x235   : > { %1046 = vrot.lane.b32.xlu0 %v4078_v21, %s4360_s26  ;;  %v2155_v57 = vsel %vm781_vm6, %v2153_v37, %v6040_v59 }
 0x236   : > { %v2120_v11 = vpop.permute.xlu1 %2119  ;;  %p4265_p12 = pnand %p4264_p8, %p4439_p9 }
 0x237   : > { %v2476_v25 = vpop.permute.xlu0 %2475  ;;  %v2168_v30 = vsel %vm777_vm5, %v5556_v26, %v2120_v11 }
 0x238   : > { %1081 = vrot.lane.b32.xlu1 %v4082_v7, %s4360_s26  ;;  %v2170_v14 = vsel %vm781_vm6, %v2168_v30, %v6047_v54  ;;  %v2544_v36 = vsel %vm777_vm5, %v5563_v49, %v2476_v25  ;;  %s4139_s26 = sshll.u32 %s4335_s18, 9  ;;  %p4266_p0 = pneg %p4265_p12 }
 0x239   : > { %3690 = vperm.xlu0 %4218, %v3686_v18   ;;  %v2546_v26 = vsel %vm781_vm6, %v2544_v36, %v6049_v41  ;;  %v6409_v36 = vld [vmem:[#allocation23_spill] sm:$0xff]  ;;  %s6240_s7 = scalar_lea.hbm %s6293_s4, %s4139_s26  ;;  %s4361_s18 = smov [#allocation7]  }
 0x23a   : > { %v2511_v47 = vpop.permute.xlu1 %2510  ;;  %s4267_s27 = sshll.u32 %s4361_s18, 4  ;;  %s4268_s27 = int_to_ptr.vmem [resolvable:$false] %s4267_s27 }
 0x23b   : > { %v2095_v9 = vpop.permute.xlu0 %2094  ;;  %v2559_v17 = vsel %vm777_vm5, %v5579_v19, %v2511_v47  ;;  %s4269_s10 = scalar_lea.vmem %s4268_s27, 1024  ;;  %p4270_p1 = scmp.lt.s32.totalorder %s6235_s24, %s4268_s27 }
 0x23c   : > { %3695 = vperm.xlu1 %4219, %v3687_v2   ;;  %v2157_v35 = vsel %vm784_vm7, %v2155_v57, %v2095_v9  ;;  %v2561_v59 = vsel %vm781_vm6, %v2559_v17, %v6054_v48  ;;  %v1399_v17 = vsel %vm777_vm5, %v6409_v36, %v5699_v51  ;;  %p4271_p3 = scmp.lt.s32.totalorder %s4269_s10, %s4263_s9 }
 0x23d   : > { %3711 = vperm.xlu0 %4218, %v3703_v6   ;;  %v2159_v54 = vsel %vm787_vm8, %v2157_v35, %v6057_v32 }
 0x23e   : > { %v2130_v46 = vpop.permute.xlu1 %2129  ;;  %p4272_p5 = por %p4271_p3, %p4270_p1 }
 0x23f   : > { %v2486_v12 = vpop.permute.xlu0 %2485  ;;  %v2172_v15 = vsel %vm784_vm7, %v2170_v14, %v2130_v46  ;;  %v6408_v14 = vld [vmem:[#allocation20_spill] sm:$0xff] }
 0x240   : > { %3706 = vperm.xlu1 %4219, %v3702_v5   ;;  %v2174_v24 = vsel %vm787_vm8, %v2172_v15, %v2135_v56  ;;  %v2548_v34 = vsel %vm784_vm7, %v2546_v26, %v2486_v12  ;;  %p4273_p6 = pnand %p4272_p5, %p4266_p0 }
 0x241   : > { %v2550_v41 = vsel %vm787_vm8, %v2548_v34, %v6061_v20  ;;  %v6413_v34 = vld [vmem:[#allocation33_spill] sm:$0xff] }
 0x242   : > { %v2521_v62 = vpop.permute.xlu1 %2520 }
 0x243   : > { %v2105_v1 = vpop.permute.xlu0 %2104  ;;  %v2563_v19 = vsel %vm784_vm7, %v2561_v59, %v2521_v62  ;;  %v6410_v59 = vld [vmem:[#allocation11_spill] sm:$0xff] }
 0x244   : > { %v2161_v31 = vsel %vm790_vm9, %v2159_v54, %v2105_v1  ;;  %v2565_v4 = vsel %vm787_vm8, %v2563_v19, %v2526_v8  ;;  %v1762_v54 = vsel %vm777_vm5, %v6410_v59, %v5642_v13  ;;  %v6414_v13 = vld [vmem:[#allocation28_spill] sm:$0xff] }
 0x245   : > { %v2163_v48 = vsel %vm793_vm10, %v2161_v31, %v2110_v52 }
 0x246   : > { %v2140_v22 = vpop.permute.xlu1 %2139 }
 0x247   : > { %v2496_v42 = vpop.permute.xlu0 %2495  ;;  %v2176_v38 = vsel %vm790_vm9, %v2174_v24, %v2140_v22  ;;  %v1384_v22 = vsel %vm777_vm5, %v6408_v14, %v5691_v40  ;;  %v6411_v40 = vld [vmem:[#allocation17_spill] sm:$0xff] }
 0x248   : > { %v2178_v55 = vsel %vm793_vm10, %v2176_v38, %v2145_v28  ;;  %v2552_v32 = vsel %vm790_vm9, %v2550_v41, %v2496_v42  ;;  %v1386_v15 = vsel %vm781_vm6, %v1384_v22, %v5661_v50  ;;  %v1401_v42 = vsel %vm781_vm6, %v1399_v17, %v5678_v63 }
 0x249   : > { %v2554_v20 = vsel %vm793_vm10, %v2552_v32, %v2501_v23  ;;  %v1777_v24 = vsel %vm777_vm5, %v6411_v40, %v5645_v58  ;;  %v1403_v19 = vsel %vm784_vm7, %v1401_v42, %v6413_v34  ;;  %v1764_v41 = vsel %vm781_vm6, %v1762_v54, %v6414_v13  ;;  %v6416_v32 = vld [vmem:[#allocation30_spill] sm:$0xff]  ;;  %v6418_v42 = vld [vmem:[#allocation12_spill] sm:$0xff]  ;;  %v6419_v54 = vld [vmem:[#allocation13_spill] sm:$0xff] }
 0x24a   : > { %v2531_v49 = vpop.permute.xlu1 %2530 }
 0x24b   : > { %v2115_v27 = vpop.permute.xlu0 %2114  ;;  %v2567_v61 = vsel %vm790_vm9, %v2565_v4, %v2531_v49  ;;  %v6412_v49 = vld [vmem:[#allocation32_spill] sm:$0xff]  ;;  %v6415_v4 = vld [vmem:[#allocation29_spill] sm:$0xff] }
 0x24c   : > { %v2165_v3 = vsel %vm796_vm11, %v2163_v48, %v2115_v27  ;;  %v2569_v29 = vsel %vm793_vm10, %v2567_v61, %v2536_v60  ;;  %v1388_v51 = vsel %vm784_vm7, %v1386_v15, %v6412_v49  ;;  %v1779_v58 = vsel %vm781_vm6, %v1777_v24, %v6415_v4 }
 0x24d   : > { %v1766_v61 = vsel %vm784_vm7, %v1764_v41, %v6416_v32 }
 0x24e   : > { %v2150_v43 = vpop.permute.xlu1 %2149 }
 0x24f   : > { %v2180_v45 = vsel %vm796_vm11, %v2178_v55, %v2150_v43  ;;  %v2506_v56 = vpop.permute.xlu0 %2505 }
 0x250   : > { %v3967_v39 = vcombine.low %v2165_v3, %v2180_v45  ;;  %v2556_v16 = vsel %vm796_vm11, %v2554_v20, %v2506_v56  ;;  %v6417_v3 = vld [vmem:[#allocation31_spill] sm:$0xff] }
 0x251   : > { %v1781_v45 = vsel %vm784_vm7, %v1779_v58, %v6417_v3 }
 0x252   : > { %2187 = vst [vmem:[#allocation2 + $0x20] sm:$0x33] %v3967_v39  ;;  %v2541_v8 = vpop.permute.xlu1 %2540 }
 0x253   : > { %v2571_v52 = vsel %vm796_vm11, %v2569_v29, %v2541_v8  ;;  %v1331_v53 = vpop.permute.xlu0 %1330 }
 0x254   : > { %v3982_v28 = vcombine.low %v2556_v16, %v2571_v52  ;;  %v1390_v31 = vsel %vm787_vm8, %v1388_v51, %v1331_v53 }
 0x256   : > { %2578 = vst [vmem:[#allocation2 + $0x28] sm:$0x33] %v3982_v28  ;;  %v1366_v44 = vpop.permute.xlu1 %1365 }
 0x257   : > { %v1709_v0 = vpop.permute.xlu0 %1708  ;;  %v1405_v63 = vsel %vm787_vm8, %v1403_v19, %v1366_v44 }
 0x258   : > { %v1768_v29 = vsel %vm787_vm8, %v1766_v61, %v1709_v0 }
 0x25a   : > { %v1744_v10 = vpop.permute.xlu1 %1743 }
 0x25b   : > { %v6124_v33 = vpop.permute.xlu0 %710  ;;  %v1783_v8 = vsel %vm787_vm8, %v1781_v45, %v1744_v10 }
 0x25c   : > { %v780_v59 = vsel %vm777_vm5, %v6418_v42, %v6124_v33 }
 0x25d   : > { %v4225_v21 = vld [vmem:[#allocation2 + $0x24] ss:$8 sps:$4 sm:$0xff]   ;;  %v4227_v11 = vld [vmem:[#allocation2 + $0x20] ss:$8 sps:$4 sm:$0xff]  }
 0x25e   : > { %v6126_v7 = vpop.permute.xlu1 %745  ;;  %3653 = vmatprep.subr.bf16.mxu0 %v4225_v21 }
 0x25f   : > { %v6128_v23 = vpop.permute.xlu0 %1016  ;;  %3654 = vmatpush1.bf16.msra.mxu0 %v4227_v11  ;;  %v801_v40 = vsel %vm777_vm5, %v6419_v54, %v6126_v7 }
 0x262   : > { %v6130_v60 = vpop.permute.xlu1 %1051 }
 0x263   : > { %v1336_v25 = vpop.permute.xlu0 %1335 }
 0x264   : > { %v1392_v38 = vsel %vm790_vm9, %v1390_v31, %v1336_v25 }
 0x266   : > { %v1371_v47 = vpop.permute.xlu1 %1370 }
 0x267   : > { %v1714_v9 = vpop.permute.xlu0 %1713  ;;  %v1407_v27 = vsel %vm790_vm9, %v1405_v63, %v1371_v47  ;;  %v6420_v63 = vld [vmem:[#allocation18_spill] sm:$0xff] }
 0x268   : > { %v1770_v52 = vsel %vm790_vm9, %v1768_v29, %v1714_v9  ;;  %v1085_v7 = vsel %vm777_vm5, %v6420_v63, %v6128_v23 }
 0x26a   : > { %v1749_v2 = vpop.permute.xlu1 %1748 }
 0x26b   : > { %v6132_v18 = vpop.permute.xlu0 %715  ;;  %v1785_v53 = vsel %vm790_vm9, %v1783_v8, %v1749_v2  ;;  %v4234_v8 = vld [vmem:[%s6290_s1] sm:$0xff]  }
 0x26c   : > { %v783_v24 = vsel %vm781_vm6, %v780_v59, %v6132_v18 }
 0x26e   : > { %v6134_v5 = vpop.permute.xlu1 %750 }
 0x26f   : > { %v6136_v6 = vpop.permute.xlu0 %1021  ;;  %v803_v49 = vsel %vm781_vm6, %v801_v40, %v6134_v5 }
 0x272   : > { %v6138_v46 = vpop.permute.xlu1 %1056 }
 0x273   : > { %v1341_v12 = vpop.permute.xlu0 %1340 }
 0x274   : > { %v1394_v48 = vsel %vm793_vm10, %v1392_v38, %v1341_v12  ;;  %v6421_v38 = vld [vmem:[#allocation19_spill] sm:$0xff] }
 0x275   : > { %v1100_v18 = vsel %vm777_vm5, %v6421_v38, %v6130_v60 }
 0x276   : > { %v1376_v62 = vpop.permute.xlu1 %1375 }
 0x277   : > { %v1719_v37 = vpop.permute.xlu0 %1718  ;;  %v1409_v55 = vsel %vm793_vm10, %v1407_v27, %v1376_v62 }
 0x278   : > { %v1772_v28 = vsel %vm793_vm10, %v1770_v52, %v1719_v37 }
 0x27a   : > { %v1754_v30 = vpop.permute.xlu1 %1753 }
 0x27b   : > { %v721_v1 = vpop.permute.xlu0 %720  ;;  %v1787_v44 = vsel %vm793_vm10, %v1785_v53, %v1754_v30 }
 0x27c   : > { %v786_v34 = vsel %vm784_vm7, %v783_v24, %v721_v1  ;;  %v1087_v1 = vsel %vm781_vm6, %v1085_v7, %v6136_v6 }
 0x27e   : > { %v756_v57 = vpop.permute.xlu1 %755 }
 0x27f   : > { %v6146_v35 = vpop.permute.xlu0 %1026  ;;  %v805_v19 = vsel %vm784_vm7, %v803_v49, %v756_v57  ;;  %v1102_v57 = vsel %vm781_vm6, %v1100_v18, %v6138_v46 }
 0x280   : > { %v1089_v23 = vsel %vm784_vm7, %v1087_v1, %v6146_v35 }
 0x282   : > { %v6152_v26 = vpop.permute.xlu1 %1061 }
 0x283   : > { %v1346_v50 = vpop.permute.xlu0 %1345  ;;  %v1104_v60 = vsel %vm784_vm7, %v1102_v57, %v6152_v26 }
 0x284   : > { %v1396_v56 = vsel %vm796_vm11, %v1394_v48, %v1346_v50 }
 0x286   : > { %v1381_v43 = vpop.permute.xlu1 %1380 }
 0x287   : > { %v1411_v39 = vsel %vm796_vm11, %v1409_v55, %v1381_v43  ;;  %v1724_v20 = vpop.permute.xlu0 %1723 }
 0x288   : > { %v3937_v16 = vcombine.low %v1396_v56, %v1411_v39  ;;  %v1774_v11 = vsel %vm796_vm11, %v1772_v28, %v1724_v20 }
 0x28a   : > { %1418 = vst [vmem:[#allocation2 + $0x18] sm:$0x33] %v3937_v16  ;;  %v1759_v21 = vpop.permute.xlu1 %1758 }
 0x28b   : > { %v1789_v25 = vsel %vm796_vm11, %v1787_v44, %v1759_v21  ;;  %v726_v47 = vpop.permute.xlu0 %725 }
 0x28c   : > { %v3952_v12 = vcombine.low %v1774_v11, %v1789_v25  ;;  %v789_v31 = vsel %vm787_vm8, %v786_v34, %v726_v47 }
 0x28e   : > { %1796 = vst [vmem:[#allocation2 + $0x10] sm:$0x33] %v3952_v12  ;;  %v761_v0 = vpop.permute.xlu1 %760 }
 0x28f   : > { %v1032_v10 = vpop.permute.xlu0 %1031  ;;  %v807_v33 = vsel %vm787_vm8, %v805_v19, %v761_v0 }
 0x290   : > { %v1091_v6 = vsel %vm787_vm8, %v1089_v23, %v1032_v10 }
 0x292   : > { %v1067_v62 = vpop.permute.xlu1 %1066 }
 0x293   : > { %v731_v14 = vpop.permute.xlu0 %730  ;;  %v1106_v55 = vsel %vm787_vm8, %v1104_v60, %v1067_v62 }
 0x294   : > { %v792_v5 = vsel %vm790_vm9, %v789_v31, %v731_v14 }
 0x295   : > { %v4228_v9 = vld [vmem:[#allocation2 + $0x1c] ss:$-8 sps:$4 sm:$0xff]   ;;  %v4230_v22 = vld [vmem:[#allocation2 + $0x18] ss:$-8 sps:$4 sm:$0xff]  }
 0x296   : > { %v766_v2 = vpop.permute.xlu1 %765  ;;  %3655 = vmatprep.subr.bf16.mxu0 %v4228_v9 }
 0x297   : > { %v1037_v36 = vpop.permute.xlu0 %1036  ;;  %3656 = vmatpush1.bf16.msra.mxu0 %v4230_v22  ;;  %v809_v27 = vsel %vm790_vm9, %v807_v33, %v766_v2 }
 0x298   : > { %v1093_v32 = vsel %vm790_vm9, %v1091_v6, %v1037_v36 }
 0x29a   : > { %v1072_v37 = vpop.permute.xlu1 %1071 }
 0x29b   : > { %v736_v30 = vpop.permute.xlu0 %735  ;;  %v1108_v61 = vsel %vm790_vm9, %v1106_v55, %v1072_v37 }
 0x29c   : > { %v795_v13 = vsel %vm793_vm10, %v792_v5, %v736_v30 }
 0x29e   : > { %v771_v17 = vpop.permute.xlu1 %770 }
 0x29f   : > { %v1042_v15 = vpop.permute.xlu0 %1041  ;;  %v811_v41 = vsel %vm793_vm10, %v809_v27, %v771_v17 }
 0x2a0   : > { %v1095_v3 = vsel %vm793_vm10, %v1093_v32, %v1042_v15 }
 0x2a2   : > { %v1077_v51 = vpop.permute.xlu1 %1076 }
 0x2a3   : > { %v741_v50 = vpop.permute.xlu0 %740  ;;  %v1110_v35 = vsel %vm793_vm10, %v1108_v61, %v1077_v51 }
 0x2a4   : > { %v798_v58 = vsel %vm796_vm11, %v795_v13, %v741_v50 }
 0x2a6   : > { %v776_v4 = vpop.permute.xlu1 %775 }
 0x2a7   : > { %v813_v48 = vsel %vm796_vm11, %v811_v41, %v776_v4  ;;  %v1047_v43 = vpop.permute.xlu0 %1046 }
 0x2a8   : > { %v3907_v46 = vcombine.low %v798_v58, %v813_v48  ;;  %v1097_v45 = vsel %vm796_vm11, %v1095_v3, %v1047_v43 }
 0x2aa   : > { %820 = vst [vmem:[#allocation2 + $0x30] sm:$0x33] %v3907_v46  ;;  %v1082_v26 = vpop.permute.xlu1 %1081 }
 0x2ab   : > { %v1112_v56 = vsel %vm796_vm11, %v1110_v35, %v1082_v26 }
 0x2ac   : > { %v3922_v39 = vcombine.low %v1097_v45, %v1112_v56 }
 0x2ae   : > { %1119 = vst [vmem:[#allocation2] sm:$0x33] %v3922_v39 }
 0x2b4   : > { %v3691_v52 = vpop.permute.xlu0 %3690 }
 0x2b5   : > { %v4231_v20 = vld [vmem:[#allocation2 + $0x34] ss:$-48 sps:$4 sm:$0xff]   ;;  %v4233_v29 = vld [vmem:[#allocation2 + $0x30] ss:$-48 sps:$4 sm:$0xff]  }
 0x2b6   : > { %3657 = vmatprep.subr.bf16.mxu0 %v4231_v20 }
 0x2b7   : > { %3658 = vmatpush1.bf16.msra.mxu0 %v4233_v29  ;;  %v3696_v16 = vpop.permute.xlu1 %3695 }
 0x2b8   : > { %v3712_v62 = vpop.permute.xlu0 %3711 }
 0x2ba   : > { %4052 = vmatmul.mubr.msk.bf16.vlgmr.msra.gmra.mxu0 %vm3632_vm13, %v4234_v8 }
 0x2bb   : > { %v3707_v28 = vpop.permute.xlu1 %3706 }
 0x37a   : > { %v3677_v53 = vpop.f32.mrf.mxu0 }
 0x37b   : > { %v3698_v44 = vmul.f32 %v3691_v52, %v3677_v53 }
 0x37c   : > { %v3679_v21 = vpop.f32.mrf.mxu0 }
 0x37d   : > { %v3714_v11 = vadd.f32 %v3707_v28, %v3698_v44  ;;  %v3699_v25 = vmul.f32 %v3691_v52, %v3679_v21 }
 0x37e   : > { %v3681_v47 = vpop.f32.mrf.mxu0 }
 0x37f   : > { %v3718_v12 = vmax.f32 %v3714_v11, 0.0  ;;  %v3715_v0 = vadd.f32 %v3707_v28, %v3699_v25  ;;  %v3700_v10 = vmul.f32 %v3696_v16, %v3681_v47 }
 0x380   : > { %v3683_v14 = vpop.f32.mrf.mxu0 }
 0x381   : > { %3722 = vst [vmem:[%s277_s22] sm:$0xff] %v3718_v12  ;;  %v3719_v9 = vmax.f32 %v3715_v0, 0.0  ;;  %v3716_v22 = vadd.f32 %v3712_v62, %v3700_v10  ;;  %v3701_v2 = vmul.f32 %v3696_v16, %v3683_v14 }
 0x383   : > { %3723 = vst [vmem:[%s277_s22 + $0x8] sm:$0xff] %v3719_v9  ;;  %v3720_v36 = vmax.f32 %v3716_v22, 0.0  ;;  %v3717_v37 = vadd.f32 %v3712_v62, %v3701_v2 }
 0x385   : > { %3724 = vst [vmem:[%s277_s22 + $0x10] sm:$0xff] %v3720_v36  ;;  %v3721_v30 = vmax.f32 %v3717_v37, 0.0 }
 0x387   : > { %3725 = vst [vmem:[%s277_s22 + $0x18] sm:$0xff] %v3721_v30 }
 0x388   : > { %4276 = shalt.err (!%p4273_p6)
}
 0x389   : > { %s4277_s11 = scalar_lea.hbm %s6240_s7, 512  ;;  %s4281_s14 = scalar_lea.hbm %s6293_s4, 1024 }
 0x38a   : > { %p4278_p7 = scmp.ne.s32.totalorder %s6240_s7, %s4277_s11  ;;  %p4282_p13 = scmp.lt.s32.totalorder %s6240_s7, %s6293_s4 }
 0x38b   : > { %p4283_p2 = scmp.lt.s32.totalorder %s4281_s14, %s4277_s11 }
 0x38c   : > { %p4279_p10 = pnand %p4278_p7, %p4439_p9 }
 0x38d   : > { %p4284_p8 = por %p4283_p2, %p4282_p13 }
 0x38e   : > { %p4280_p4 = pneg %p4279_p10 }
 0x390   : > { %p4285_p12 = pnand %p4284_p8, %p4280_p4 }
 0x392   : > { %4288 = shalt.err (!%p4285_p12)
}
 0x393   : > { %s4362_s25 = smov 256  }
 0x394   : > { %4142 = dma.vmem_to_hbm [thread:$0]  (%p4439_p9), %s6235_s24, 512, %s6240_s7, %s3727_s8, %s4362_s25, %s4362_s25, %s4357_s21  }
 0x395 PF: > { %s3758_s5 = sand.u32 1, %s4323_s15   ;;  %p6422_p0 = scmp.ge.s32.totalorder %s4343_s20, 2 }
 0x396   : > { %s3759_s9 = scalar_lea.sflag [#allocation6], %s3758_s5 }
 0x397   : > { %p4149_p1 = pnand %p6422_p0, %p4446_p11 }
 0x399   : > { %p4150_p3 = pneg %p4149_p1 }
 0x39b   : > { %4318 = dma.done.wait (%p4150_p3), %s3759_s9, 512  }
 0x39c   : > { %4320 = vsyncadd (%p4150_p3), %s3759_s9, 4294966784  ;;  %s20_s20 = sadd.s32 1, %s4343_s20   ;;  %s6423_s15 = smov %s4327_s16 }
 0x39d   : > { %p17_p5 = scmp.ge.s32.totalorder %s20_s20, 4   ;;  %s6424_s16 = smov %s4331_s17 }
 0x39e   : > { %s6425_s17 = smov %s4444_s29  ;;  %s6426_s18 = smov %s4339_s19 }
 0x39f   : > { %s6427_s19 = smov %s6429_s23  ;;  %19 = sbr.rel (!%p17_p5) target bundleno = 6 (0x6), region = 94 }
 0x3a4   :  { %3764 = vsyncpa [#allocation5], 1 }
 0x3a5   :  { %3766 = vsyncpa [#allocation5 + $0x1], 1 }
 0x3a6   :  { %3767 = vsyncpa [#allocation6], 1 }
 0x3a7   :  { %3769 = vsyncpa [#allocation6 + $0x1], 1 }

</bundles_post_ra>
